<compile_context>
chip_gen: v5e
topology: v5e:2x2
jax: 0.10.0
libtpu: 0.0.40
codegen_flags: <defaults>
</compile_context>

<pallas_src>
import functools
import math

import jax
import jax.numpy as jnp
import numpy as np
from jax.experimental import pallas as pl
from jax.experimental.pallas import tpu as pltpu

_ROW_TILE = 512      # target token rows per grid step (multiple of 8)
_WIN_TILE = 16       # target windows per grid step in the attention kernels
_LN_EPS = 1e-5       # nn.LayerNorm default


# ----------------------------------------------------------------------------
# tiling / compiler-params helpers
# ----------------------------------------------------------------------------
@functools.lru_cache(maxsize=None)
def _vmem_limit_bytes():
    cap = 128 * 1024 * 1024
    try:
        cap = int(getattr(pltpu.get_tpu_info(), "vmem_capacity_bytes", cap))
    except Exception:
        pass
    # ~40 MiB scoped on 64-MiB parts (v7x), ~96 MiB on 128-MiB parts (v5e/v6e)
    return (40 if cap <= 64 * 1024 * 1024 else 96) * 1024 * 1024


def _compiler_params():
    return pltpu.CompilerParams(
        dimension_semantics=("parallel",),
        vmem_limit_bytes=_vmem_limit_bytes(),
    )


def _row_tiling(m, target=_ROW_TILE):
    """Largest divisor of m that is a multiple of 8 and <= target, preferring >=2
    grid steps (two-TensorCore balance on v7x). Fallback: full extent (never pads)."""
    def best(cap):
        for t in range(min(cap, m), 7, -1):
            if m % t == 0 and t % 8 == 0:
                return t
        return None
    t = best(min(target, m // 2)) or best(target)
    return t if t is not None else m


def _window_tile(count, n, target=_WIN_TILE):
    """Window-block size dividing `count`, capped so a (wb, n, n) f32 score block
    stays ~<= 2 MiB."""
    cap = max(1, (2 * 1024 * 1024) // (n * n * 4))
    t = max(1, min(target, cap, count))
    while count % t:
        t -= 1
    return t


# ----------------------------------------------------------------------------
# Pallas kernels
# ----------------------------------------------------------------------------
def _ln_rows(x_ref, g_ref, b_ref):
    x = x_ref[...].astype(jnp.float32)
    mu = jnp.mean(x, axis=-1, keepdims=True)
    xc = x - mu
    var = jnp.mean(xc * xc, axis=-1, keepdims=True)
    return (xc * jax.lax.rsqrt(var + _LN_EPS) * g_ref[...].astype(jnp.float32)
            + b_ref[...].astype(jnp.float32))


def _layernorm_kernel(x_ref, g_ref, b_ref, o_ref):
    o_ref[...] = _ln_rows(x_ref, g_ref, b_ref).astype(o_ref.dtype)


def _matmul_bias_kernel(x_ref, w_ref, b_ref, o_ref):
    acc = jnp.dot(x_ref[...], w_ref[...], preferred_element_type=jnp.float32)
    o_ref[...] = (acc + b_ref[...].astype(jnp.float32)).astype(o_ref.dtype)


def _matmul_bias_res_kernel(x_ref, w_ref, b_ref, r_ref, o_ref):
    acc = jnp.dot(x_ref[...], w_ref[...], preferred_element_type=jnp.float32)
    o_ref[...] = (acc + b_ref[...].astype(jnp.float32)
                  + r_ref[...].astype(jnp.float32)).astype(o_ref.dtype)


def _ln_matmul_bias_kernel(x_ref, g_ref, b_ref, w_ref, bias_ref, o_ref):
    y = _ln_rows(x_ref, g_ref, b_ref).astype(w_ref.dtype)
    acc = jnp.dot(y, w_ref[...], preferred_element_type=jnp.float32)
    o_ref[...] = (acc + bias_ref[...].astype(jnp.float32)).astype(o_ref.dtype)


def _ln_matmul_kernel(x_ref, g_ref, b_ref, w_ref, o_ref):
    y = _ln_rows(x_ref, g_ref, b_ref).astype(w_ref.dtype)
    o_ref[...] = jnp.dot(y, w_ref[...],
                         preferred_element_type=jnp.float32).astype(o_ref.dtype)


def _ln_mlp_res_kernel(x_ref, g_ref, b_ref, w1_ref, b1_ref, w2_ref, b2_ref, o_ref):
    # TODO(synk): for very large dim/hidden on v7x, tile the hidden dim with an extra
    # "arbitrary" grid axis (f32 accumulator scratch) to bound the resident weight VMEM.
    y = _ln_rows(x_ref, g_ref, b_ref).astype(w1_ref.dtype)
    h = (jnp.dot(y, w1_ref[...], preferred_element_type=jnp.float32)
         + b1_ref[...].astype(jnp.float32))
    # TODO(synk): nn.GELU defaults to the exact erf form; tanh approximation used here.
    h = jax.nn.gelu(h, approximate=True).astype(w2_ref.dtype)
    out = (jnp.dot(h, w2_ref[...], preferred_element_type=jnp.float32)
           + b2_ref[...].astype(jnp.float32))
    o_ref[...] = (x_ref[...].astype(jnp.float32) + out).astype(o_ref.dtype)


def _attn_body(qkv, bias, mask, scale, nh, out_dtype):
    wb, n, c3 = qkv.shape
    c = c3 // 3
    dh = c // nh
    outs = []
    for h in range(nh):                     # static per-head lane slices of the slab
        q = qkv[:, :, h * dh:(h + 1) * dh]
        k = qkv[:, :, c + h * dh:c + (h + 1) * dh]
        v = qkv[:, :, 2 * c + h * dh:2 * c + (h + 1) * dh]
        s = jnp.einsum("bqd,bkd->bqk", q, k,
                       preferred_element_type=jnp.float32) * scale
        s = s + bias[h][None, :, :]
        if mask is not None:
            s = s + mask
        s = s - jnp.max(s, axis=-1, keepdims=True)
        e = jnp.exp(s)
        p = e * pl.reciprocal(jnp.sum(e, axis=-1, keepdims=True), approx=True)
        outs.append(jnp.einsum("bqk,bkd->bqd", p.astype(v.dtype), v,
                               preferred_element_type=jnp.float32))
    return jnp.concatenate(outs, axis=-1).astype(out_dtype)


def _window_attn_kernel(qkv_ref, bias_ref, o_ref, *, scale, nh):
    o_ref[...] = _attn_body(qkv_ref[...], bias_ref[...], None, scale, nh, o_ref.dtype)


def _window_attn_masked_kernel(qkv_ref, bias_ref, mask_ref, o_ref, *, scale, nh):
    o_ref[...] = _attn_body(qkv_ref[...], bias_ref[...], mask_ref[...],
                            scale, nh, o_ref.dtype)


# ----------------------------------------------------------------------------
# pallas_call wrappers (row-tiled, parallel 1-D grids, no padding/slicing)
# ----------------------------------------------------------------------------
def layer_norm_rows(x2d, gamma, beta):
    m, c = x2d.shape
    tm = _row_tiling(m)
    return pl.pallas_call(
        _layernorm_kernel,
        out_shape=jax.ShapeDtypeStruct((m, c), x2d.dtype),
        grid_spec=pltpu.PrefetchScalarGridSpec(
            num_scalar_prefetch=0,
            grid=(m // tm,),
            in_specs=[
                pl.BlockSpec((tm, c), lambda i: (i, 0)),
                pl.BlockSpec((1, c), lambda i: (0, 0)),
                pl.BlockSpec((1, c), lambda i: (0, 0)),
            ],
            out_specs=pl.BlockSpec((tm, c), lambda i: (i, 0)),
        ),
        compiler_params=_compiler_params(),
    )(x2d, gamma.reshape(1, c), beta.reshape(1, c))


def matmul_bias(x2d, w, b):
    m, k = x2d.shape
    n = w.shape[1]
    tm = _row_tiling(m)
    return pl.pallas_call(
        _matmul_bias_kernel,
        out_shape=jax.ShapeDtypeStruct((m, n), x2d.dtype),
        grid_spec=pltpu.PrefetchScalarGridSpec(
            num_scalar_prefetch=0,
            grid=(m // tm,),
            in_specs=[
                pl.BlockSpec((tm, k), lambda i: (i, 0)),
                pl.BlockSpec((k, n), lambda i: (0, 0)),
                pl.BlockSpec((1, n), lambda i: (0, 0)),
            ],
            out_specs=pl.BlockSpec((tm, n), lambda i: (i, 0)),
        ),
        compiler_params=_compiler_params(),
    )(x2d, w, b.reshape(1, n))


def matmul_bias_residual(x2d, w, b, res2d):
    m, k = x2d.shape
    n = w.shape[1]
    tm = _row_tiling(m)
    return pl.pallas_call(
        _matmul_bias_res_kernel,
        out_shape=jax.ShapeDtypeStruct((m, n), x2d.dtype),
        grid_spec=pltpu.PrefetchScalarGridSpec(
            num_scalar_prefetch=0,
            grid=(m // tm,),
            in_specs=[
                pl.BlockSpec((tm, k), lambda i: (i, 0)),
                pl.BlockSpec((k, n), lambda i: (0, 0)),
                pl.BlockSpec((1, n), lambda i: (0, 0)),
                pl.BlockSpec((tm, n), lambda i: (i, 0)),
            ],
            out_specs=pl.BlockSpec((tm, n), lambda i: (i, 0)),
        ),
        compiler_params=_compiler_params(),
    )(x2d, w, b.reshape(1, n), res2d)


def ln_matmul_bias(x2d, gamma, beta, w, bias):
    m, k = x2d.shape
    n = w.shape[1]
    tm = _row_tiling(m)
    return pl.pallas_call(
        _ln_matmul_bias_kernel,
        out_shape=jax.ShapeDtypeStruct((m, n), x2d.dtype),
        grid_spec=pltpu.PrefetchScalarGridSpec(
            num_scalar_prefetch=0,
            grid=(m // tm,),
            in_specs=[
                pl.BlockSpec((tm, k), lambda i: (i, 0)),
                pl.BlockSpec((1, k), lambda i: (0, 0)),
                pl.BlockSpec((1, k), lambda i: (0, 0)),
                pl.BlockSpec((k, n), lambda i: (0, 0)),
                pl.BlockSpec((1, n), lambda i: (0, 0)),
            ],
            out_specs=pl.BlockSpec((tm, n), lambda i: (i, 0)),
        ),
        compiler_params=_compiler_params(),
    )(x2d, gamma.reshape(1, k), beta.reshape(1, k), w, bias.reshape(1, n))


def ln_matmul(x2d, gamma, beta, w):
    m, k = x2d.shape
    n = w.shape[1]
    tm = _row_tiling(m)
    return pl.pallas_call(
        _ln_matmul_kernel,
        out_shape=jax.ShapeDtypeStruct((m, n), x2d.dtype),
        grid_spec=pltpu.PrefetchScalarGridSpec(
            num_scalar_prefetch=0,
            grid=(m // tm,),
            in_specs=[
                pl.BlockSpec((tm, k), lambda i: (i, 0)),
                pl.BlockSpec((1, k), lambda i: (0, 0)),
                pl.BlockSpec((1, k), lambda i: (0, 0)),
                pl.BlockSpec((k, n), lambda i: (0, 0)),
            ],
            out_specs=pl.BlockSpec((tm, n), lambda i: (i, 0)),
        ),
        compiler_params=_compiler_params(),
    )(x2d, gamma.reshape(1, k), beta.reshape(1, k), w)


def ln_mlp_residual(x2d, gamma, beta, w1, b1, w2, b2):
    m, c = x2d.shape
    ch = w1.shape[1]
    tm = _row_tiling(m)
    return pl.pallas_call(
        _ln_mlp_res_kernel,
        out_shape=jax.ShapeDtypeStruct((m, c), x2d.dtype),
        grid_spec=pltpu.PrefetchScalarGridSpec(
            num_scalar_prefetch=0,
            grid=(m // tm,),
            in_specs=[
                pl.BlockSpec((tm, c), lambda i: (i, 0)),
                pl.BlockSpec((1, c), lambda i: (0, 0)),
                pl.BlockSpec((1, c), lambda i: (0, 0)),
                pl.BlockSpec((c, ch), lambda i: (0, 0)),
                pl.BlockSpec((1, ch), lambda i: (0, 0)),
                pl.BlockSpec((ch, c), lambda i: (0, 0)),
                pl.BlockSpec((1, c), lambda i: (0, 0)),
            ],
            out_specs=pl.BlockSpec((tm, c), lambda i: (i, 0)),
        ),
        compiler_params=_compiler_params(),
    )(x2d, gamma.reshape(1, c), beta.reshape(1, c),
      w1, b1.reshape(1, ch), w2, b2.reshape(1, c))


def window_attention(qkv, rel_bias, *, num_heads, scale):
    """Unmasked W-MSA. qkv: (B_, N, 3C) f-dtype, rel_bias: (nh, N, N) f32."""
    b_, n, c3 = qkv.shape
    c = c3 // 3
    wb = _window_tile(b_, n)
    kern = functools.partial(_window_attn_kernel, scale=scale, nh=num_heads)
    return pl.pallas_call(
        kern,
        out_shape=jax.ShapeDtypeStruct((b_, n, c), qkv.dtype),
        grid_spec=pltpu.PrefetchScalarGridSpec(
            num_scalar_prefetch=0,
            grid=(b_ // wb,),
            in_specs=[
                pl.BlockSpec((wb, n, c3), lambda i: (i, 0, 0)),
                pl.BlockSpec((num_heads, n, n), lambda i: (0, 0, 0)),
            ],
            out_specs=pl.BlockSpec((wb, n, c), lambda i: (i, 0, 0)),
        ),
        compiler_params=_compiler_params(),
    )(qkv, rel_bias)


def window_attention_masked(qkv, rel_bias, mask, *, num_heads, scale):
    """Shifted W-MSA. mask: (nW, N, N) f32 kept nW-sized; mapped via index_map."""
    b_, n, c3 = qkv.shape
    c = c3 // 3
    n_win = mask.shape[0]
    wb = _window_tile(n_win, n)            # wb | nW  =>  a block never crosses an image
    nwb = n_win // wb
    if nwb == 1:
        mask_map = lambda i: (0, 0, 0)
    else:
        mask_map = lambda i: (i % nwb, 0, 0)
    kern = functools.partial(_window_attn_masked_kernel, scale=scale, nh=num_heads)
    return pl.pallas_call(
        kern,
        out_shape=jax.ShapeDtypeStruct((b_, n, c), qkv.dtype),
        grid_spec=pltpu.PrefetchScalarGridSpec(
            num_scalar_prefetch=0,
            grid=(b_ // wb,),
            in_specs=[
                pl.BlockSpec((wb, n, c3), lambda i: (i, 0, 0)),
                pl.BlockSpec((num_heads, n, n), lambda i: (0, 0, 0)),
                pl.BlockSpec((wb, n, n), mask_map),
            ],
            out_specs=pl.BlockSpec((wb, n, c), lambda i: (i, 0, 0)),
        ),
        compiler_params=_compiler_params(),
    )(qkv, rel_bias, mask)


# ----------------------------------------------------------------------------
# Swin glue (pure data movement)
# ----------------------------------------------------------------------------
def _window_partition(x, ws):
    b, h, w, c = x.shape
    x = x.reshape(b, h // ws, ws, w // ws, ws, c)
    x = jnp.transpose(x, (0, 1, 3, 2, 4, 5))
    return x.reshape(-1, ws, ws, c)


def _window_reverse(windows, ws, h, w):
    b = windows.shape[0] // ((h // ws) * (w // ws))
    x = windows.reshape(b, h // ws, w // ws, ws, ws, -1)
    x = jnp.transpose(x, (0, 1, 3, 2, 4, 5))
    return x.reshape(b, h, w, -1)


@functools.lru_cache(maxsize=None)
def _relative_position_index(ws):
    coords = np.stack(np.meshgrid(np.arange(ws), np.arange(ws), indexing="ij"))
    flat = coords.reshape(2, -1)
    rel = flat[:, :, None] - flat[:, None, :]
    rel = rel.transpose(1, 2, 0).astype(np.int64)
    rel[:, :, 0] += ws - 1
    rel[:, :, 1] += ws - 1
    rel[:, :, 0] *= 2 * ws - 1
    return rel.sum(-1)  # (ws*ws, ws*ws)


def _create_attn_mask(h, w, ws, shift):
    hp = int(np.ceil(h / ws)) * ws
    wp = int(np.ceil(w / ws)) * ws
    img_mask = np.zeros((1, hp, wp, 1), dtype=np.float32)
    slices = (slice(0, -ws), slice(-ws, -shift), slice(-shift, None))
    cnt = 0
    for hs in slices:
        for wsl in slices:
            img_mask[:, hs, wsl, :] = cnt
            cnt += 1
    m = img_mask.reshape(1, hp // ws, ws, wp // ws, ws, 1)
    m = m.transpose(0, 1, 3, 2, 4, 5).reshape(-1, ws * ws)
    attn_mask = m[:, None, :] - m[:, :, None]
    return np.where(attn_mask != 0, -100.0, 0.0).astype(np.float32)  # (nW, N, N)


def _swin_block_forward(x, h, w, p, shift, ws, num_heads, attn_mask_np):
    b, l, c = x.shape
    nh = num_heads
    dh = c // nh
    n = ws * ws
    shortcut = x.reshape(b * l, c)

    pad_r = (ws - w % ws) % ws
    pad_b = (ws - h % ws) % ws
    hp, wp = h + pad_b, w + pad_r

    if pad_r == 0 and pad_b == 0:
        # Fused path: row-wise LN commutes with cyclic roll + window partition
        # (pure row permutations) when no spatial padding is added.
        xi = x.reshape(b, h, w, c)
        if shift > 0:
            xi = jnp.roll(xi, (-shift, -shift), axis=(1, 2))
        xw = _window_partition(xi, ws).reshape(-1, n, c)
        b_ = xw.shape[0]
        qkv = ln_matmul_bias(xw.reshape(b_ * n, c), p["g1"], p["b1"],
                             p["w_qkv"], p["b_qkv"])
    else:
        # Padded fallback: LN first so padded rows stay exactly zero post-norm.
        xn = layer_norm_rows(shortcut, p["g1"], p["b1"]).reshape(b, h, w, c)
        xn = jnp.pad(xn, ((0, 0), (0, pad_b), (0, pad_r), (0, 0)))
        if shift > 0:
            xn = jnp.roll(xn, (-shift, -shift), axis=(1, 2))
        xw = _window_partition(xn, ws).reshape(-1, n, c)
        b_ = xw.shape[0]
        qkv = matmul_bias(xw.reshape(b_ * n, c), p["w_qkv"], p["b_qkv"])

    qkv = qkv.reshape(b_, n, 3 * c)

    rel_idx = jnp.asarray(_relative_position_index(ws).reshape(-1))
    rel_bias = (p["rel_table"][rel_idx].reshape(n, n, nh)
                .transpose(2, 0, 1).astype(jnp.float32))          # (nh, N, N) f32

    scale = float(dh) ** -0.5
    if shift > 0:
        mask = jnp.asarray(attn_mask_np, dtype=jnp.float32)       # (nW, N, N) f32
        attn = window_attention_masked(qkv, rel_bias, mask,
                                       num_heads=nh, scale=scale)
    else:
        attn = window_attention(qkv, rel_bias, num_heads=nh, scale=scale)

    attn = attn.reshape(-1, ws, ws, c)
    xr = _window_reverse(attn, ws, hp, wp)
    if shift > 0:
        xr = jnp.roll(xr, (shift, shift), axis=(1, 2))
    xr = xr[:, :h, :w, :].reshape(b * l, c)

    # attn output projection fused with the first residual
    x = matmul_bias_residual(xr, p["w_proj"], p["b_proj"], shortcut)
    # norm2 + MLP (GELU) fused with the second residual
    x = ln_mlp_residual(x, p["g2"], p["b2"],
                        p["w_fc1"], p["b_fc1"], p["w_fc2"], p["b_fc2"])
    return x.reshape(b, l, c)


def _patch_merging_forward(x, h, w, p):
    b, l, c = x.shape
    xi = x.reshape(b, h, w, c)
    if h % 2 or w % 2:
        xi = jnp.pad(xi, ((0, 0), (0, h % 2), (0, w % 2), (0, 0)))
    x0 = xi[:, 0::2, 0::2, :]
    x1 = xi[:, 1::2, 0::2, :]
    x2 = xi[:, 0::2, 1::2, :]
    x3 = xi[:, 1::2, 1::2, :]
    xc = jnp.concatenate([x0, x1, x2, x3], axis=-1)
    h2, w2 = xc.shape[1], xc.shape[2]
    out = ln_matmul(xc.reshape(b * h2 * w2, 4 * c), p["gamma"], p["beta"], p["w_red"])
    return out.reshape(b, h2 * w2, 2 * c)


def swin_transformer_layer_forward(x, params, *, depth, num_heads, window_size,
                                   last_layer=False):
    b, l, c = x.shape
    h = int(round(math.sqrt(l)))
    w = h
    assert l == h * w, "input feature has wrong size"
    shift = window_size // 2
    attn_mask_np = _create_attn_mask(h, w, window_size, shift)
    for i in range(depth):
        blk_shift = 0 if i % 2 == 0 else shift
        x = _swin_block_forward(x, h, w, params["blocks"][i], blk_shift,
                                window_size, num_heads, attn_mask_np)
    if not last_layer:
        x = _patch_merging_forward(x, h, w, params["downsample"])
        h, w = (h + 1) // 2, (w + 1) // 2
    else:
        x = x.reshape(b, -1, h, w)
    return x


# ----------------------------------------------------------------------------
# Pure-JAX reference (gold standard for the correctness check)
# ----------------------------------------------------------------------------
def _reference_forward(x, params, *, depth, num_heads, window_size, last_layer=False):
    hi = jax.lax.Precision.HIGHEST

    def ln(t, g, bb):
        mu = jnp.mean(t, axis=-1, keepdims=True)
        var = jnp.mean((t - mu) ** 2, axis=-1, keepdims=True)
        return (t - mu) / jnp.sqrt(var + _LN_EPS) * g + bb

    b, l, c = x.shape
    h = int(round(math.sqrt(l)))
    w = h
    ws = window_size
    shift = ws // 2
    attn_mask = jnp.asarray(_create_attn_mask(h, w, ws, shift))
    nh = num_heads
    dh = c // nh

    for i in range(depth):
        p = params["blocks"][i]
        s = 0 if i % 2 == 0 else shift
        shortcut = x
        xn = ln(x, p["g1"], p["b1"]).reshape(b, h, w, c)
        pad_r = (ws - w % ws) % ws
        pad_b = (ws - h % ws) % ws
        if pad_r or pad_b:
            xn = jnp.pad(xn, ((0, 0), (0, pad_b), (0, pad_r), (0, 0)))
        hp, wp = h + pad_b, w + pad_r
        if s > 0:
            xn = jnp.roll(xn, (-s, -s), axis=(1, 2))
        xw = _window_partition(xn, ws).reshape(-1, ws * ws, c)
        b_, n = xw.shape[0], ws * ws
        qkv = jnp.einsum("bnc,cd->bnd", xw, p["w_qkv"], precision=hi) + p["b_qkv"]
        qkv = qkv.reshape(b_, n, 3, nh, dh).transpose(2, 0, 3, 1, 4)
        q, k, v = qkv[0] * float(dh) ** -0.5, qkv[1], qkv[2]
        attn = jnp.einsum("bhqd,bhkd->bhqk", q, k, precision=hi)
        rel = p["rel_table"][jnp.asarray(_relative_position_index(ws).reshape(-1))]
        attn = attn + rel.reshape(n, n, nh).transpose(2, 0, 1)[None]
        if s > 0:
            nw = attn_mask.shape[0]
            attn = attn.reshape(b_ // nw, nw, nh, n, n) + attn_mask[None, :, None]
            attn = attn.reshape(b_, nh, n, n)
        attn = jax.nn.softmax(attn, axis=-1)
        out = jnp.einsum("bhqk,bhkd->bhqd", attn, v, precision=hi)
        out = out.transpose(0, 2, 1, 3).reshape(b_, n, c)
        out = jnp.einsum("bnc,cd->bnd", out, p["w_proj"], precision=hi) + p["b_proj"]
        xr = _window_reverse(out.reshape(-1, ws, ws, c), ws, hp, wp)
        if s > 0:
            xr = jnp.roll(xr, (s, s), axis=(1, 2))
        xr = xr[:, :h, :w, :].reshape(b, h * w, c)
        x = shortcut + xr
        y = ln(x, p["g2"], p["b2"])
        y = jnp.einsum("blc,cd->bld", y, p["w_fc1"], precision=hi) + p["b_fc1"]
        y = jax.nn.gelu(y, approximate=True)
        y = jnp.einsum("bld,dc->blc", y, p["w_fc2"], precision=hi) + p["b_fc2"]
        x = x + y

    if not last_layer:
        d = params["downsample"]
        xi = x.reshape(b, h, w, c)
        if h % 2 or w % 2:
            xi = jnp.pad(xi, ((0, 0), (0, h % 2), (0, w % 2), (0, 0)))
        x0 = xi[:, 0::2, 0::2, :]
        x1 = xi[:, 1::2, 0::2, :]
        x2 = xi[:, 0::2, 1::2, :]
        x3 = xi[:, 1::2, 1::2, :]
        xc = jnp.concatenate([x0, x1, x2, x3], axis=-1)
        h2, w2 = xc.shape[1], xc.shape[2]
        xc = ln(xc.reshape(b, h2 * w2, 4 * c), d["gamma"], d["beta"])
        x = jnp.einsum("blk,kn->bln", xc, d["w_red"], precision=hi)
    else:
        x = x.reshape(b, -1, h, w)
    return x


def _init_params(key, dim, depth, num_heads, window_size, mlp_ratio):
    hidden = int(dim * mlp_ratio)
    n_rel = (2 * window_size - 1) ** 2
    blocks = []
    for _ in range(depth):
        ks = jax.random.split(key, 14)
        key, ks = ks[0], ks[1:]
        blocks.append(dict(
            g1=1.0 + 0.1 * jax.random.normal(ks[0], (dim,), jnp.float32),
            b1=0.05 * jax.random.normal(ks[1], (dim,), jnp.float32),
            w_qkv=jax.random.normal(ks[2], (dim, 3 * dim), jnp.float32) / math.sqrt(dim),
            b_qkv=0.02 * jax.random.normal(ks[3], (3 * dim,), jnp.float32),
            rel_table=0.02 * jax.random.normal(ks[4], (n_rel, num_heads), jnp.float32),
            w_proj=jax.random.normal(ks[5], (dim, dim), jnp.float32) / math.sqrt(dim),
            b_proj=0.02 * jax.random.normal(ks[6], (dim,), jnp.float32),
            g2=1.0 + 0.1 * jax.random.normal(ks[7], (dim,), jnp.float32),
            b2=0.05 * jax.random.normal(ks[8], (dim,), jnp.float32),
            w_fc1=jax.random.normal(ks[9], (dim, hidden), jnp.float32) / math.sqrt(dim),
            b_fc1=0.02 * jax.random.normal(ks[10], (hidden,), jnp.float32),
            w_fc2=jax.random.normal(ks[11], (hidden, dim), jnp.float32) / math.sqrt(hidden),
            b_fc2=0.02 * jax.random.normal(ks[12], (dim,), jnp.float32),
        ))
    key, k1, k2, k3 = jax.random.split(key, 4)
    downsample = dict(
        gamma=1.0 + 0.1 * jax.random.normal(k1, (4 * dim,), jnp.float32),
        beta=0.05 * jax.random.normal(k2, (4 * dim,), jnp.float32),
        w_red=jax.random.normal(k3, (4 * dim, 2 * dim), jnp.float32) / math.sqrt(4 * dim),
    )
    return dict(blocks=blocks, downsample=downsample)


if __name__ == "__main__":
    B = 2
    H = W = 16
    DIM = 32
    DEPTH = 2
    NUM_HEADS = 4
    WINDOW = 4
    MLP_RATIO = 4.0
    L = H * W

    root = jax.random.PRNGKey(0)
    kx, kp = jax.random.split(root)
    x = jax.random.normal(kx, (B, L, DIM), dtype=jnp.float32)
    params = _init_params(kp, DIM, DEPTH, NUM_HEADS, WINDOW, MLP_RATIO)

    out = swin_transformer_layer_forward(
        x, params, depth=DEPTH, num_heads=NUM_HEADS, window_size=WINDOW)
    out = jax.block_until_ready(out)
    assert out.shape == (B, L // 4, 2 * DIM), out.shape

    ref = _reference_forward(
        x, params, depth=DEPTH, num_heads=NUM_HEADS, window_size=WINDOW)
    ref = jax.block_until_ready(ref)

    err = float(jnp.max(jnp.abs(out - ref)))
    ref_scale = max(float(jnp.max(jnp.abs(ref))), 1.0)
    assert err <= 2e-2 * ref_scale, (err, ref_scale)

    print("KERNEL_OK")
</pallas_src>

<mosaic_0001>
module attributes {stable_mosaic.version = 11 : i64} {
  func.func @_ln_matmul_bias_kernel(%arg0: i32, %arg1: memref<256x32xf32, #tpu.memory_space<vmem>>, %arg2: memref<1x32xf32, #tpu.memory_space<vmem>>, %arg3: memref<1x32xf32, #tpu.memory_space<vmem>>, %arg4: memref<32x96xf32, #tpu.memory_space<vmem>>, %arg5: memref<1x96xf32, #tpu.memory_space<vmem>>, %arg6: memref<256x96xf32, #tpu.memory_space<vmem>>) attributes {dimension_semantics = [#tpu.dimension_semantics<parallel>], iteration_bounds = array<i64: 2>, scalar_prefetch = 0 : i64, scratch_operands = 0 : i64, tpu.core_type = #tpu.core_type<tc>, window_params = [{transform_indices = @transform_0, window_bounds = array<i64: 256, 32>}, {pipeline_mode = #tpu.pipeline_mode<synchronous>, transform_indices = @transform_1, window_bounds = array<i64: 1, 32>}, {pipeline_mode = #tpu.pipeline_mode<synchronous>, transform_indices = @transform_2, window_bounds = array<i64: 1, 32>}, {pipeline_mode = #tpu.pipeline_mode<synchronous>, transform_indices = @transform_3, window_bounds = array<i64: 32, 96>}, {pipeline_mode = #tpu.pipeline_mode<synchronous>, transform_indices = @transform_4, window_bounds = array<i64: 1, 96>}, {transform_indices = @transform_5, window_bounds = array<i64: 256, 96>}]} {
    %c0 = arith.constant 0 : index
    %c0_0 = arith.constant 0 : index
    %0 = vector.load %arg1[%c0, %c0_0] : memref<256x32xf32, #tpu.memory_space<vmem>>, vector<256x32xf32>
    %cst = arith.constant dense<0.000000e+00> : vector<256xf32>
    %1 = vector.multi_reduction <add>, %0, %cst [1] : vector<256x32xf32> to vector<256xf32>
    %2 = vector.shape_cast %1 : vector<256xf32> to vector<256x1xf32>
    %cst_1 = arith.constant 3.200000e+01 : f32
    %3 = vector.broadcast %cst_1 : f32 to vector<256x1xf32>
    %4 = arith.divf %2, %3 : vector<256x1xf32>
    %5 = vector.broadcast %4 : vector<256x1xf32> to vector<256x32xf32>
    %6 = arith.subf %0, %5 : vector<256x32xf32>
    %7 = arith.mulf %6, %6 : vector<256x32xf32>
    %cst_2 = arith.constant dense<0.000000e+00> : vector<256xf32>
    %8 = vector.multi_reduction <add>, %7, %cst_2 [1] : vector<256x32xf32> to vector<256xf32>
    %9 = vector.shape_cast %8 : vector<256xf32> to vector<256x1xf32>
    %cst_3 = arith.constant 3.200000e+01 : f32
    %10 = vector.broadcast %cst_3 : f32 to vector<256x1xf32>
    %11 = arith.divf %9, %10 : vector<256x1xf32>
    %cst_4 = arith.constant 9.99999974E-6 : f32
    %12 = vector.broadcast %cst_4 : f32 to vector<256x1xf32>
    %13 = arith.addf %11, %12 : vector<256x1xf32>
    %14 = math.rsqrt %13 : vector<256x1xf32>
    %15 = vector.broadcast %14 : vector<256x1xf32> to vector<256x32xf32>
    %16 = arith.mulf %6, %15 : vector<256x32xf32>
    %c0_5 = arith.constant 0 : index
    %c0_6 = arith.constant 0 : index
    %17 = vector.load %arg2[%c0_5, %c0_6] : memref<1x32xf32, #tpu.memory_space<vmem>>, vector<1x32xf32>
    %18 = vector.broadcast %17 : vector<1x32xf32> to vector<256x32xf32>
    %19 = arith.mulf %16, %18 : vector<256x32xf32>
    %c0_7 = arith.constant 0 : index
    %c0_8 = arith.constant 0 : index
    %20 = vector.load %arg3[%c0_7, %c0_8] : memref<1x32xf32, #tpu.memory_space<vmem>>, vector<1x32xf32>
    %21 = vector.broadcast %20 : vector<1x32xf32> to vector<256x32xf32>
    %22 = arith.addf %19, %21 : vector<256x32xf32>
    %c0_9 = arith.constant 0 : index
    %c0_10 = arith.constant 0 : index
    %23 = vector.load %arg4[%c0_9, %c0_10] : memref<32x96xf32, #tpu.memory_space<vmem>>, vector<32x96xf32>
    %cst_11 = arith.constant dense<0.000000e+00> : vector<256x96xf32>
    %24 = tpu.matmul %22, %23, %cst_11 {dimension_numbers = #tpu.dot_dimension_numbers<[1], [0], [0], [1], [0, 0, 1, 1], [], []>} : vector<256x32xf32>, vector<32x96xf32>, vector<256x96xf32> -> vector<256x96xf32>
    %c0_12 = arith.constant 0 : index
    %c0_13 = arith.constant 0 : index
    %25 = vector.load %arg5[%c0_12, %c0_13] : memref<1x96xf32, #tpu.memory_space<vmem>>, vector<1x96xf32>
    %26 = vector.broadcast %25 : vector<1x96xf32> to vector<256x96xf32>
    %27 = arith.addf %24, %26 : vector<256x96xf32>
    %c0_14 = arith.constant 0 : index
    %c0_15 = arith.constant 0 : index
    %28 = vector.load %arg6[%c0_14, %c0_15] : memref<256x96xf32, #tpu.memory_space<vmem>>, vector<256x96xf32>
    tpu.vector_store %arg6[%c0_14, %c0_15], %27 {strides = array<i32>} : memref<256x96xf32, #tpu.memory_space<vmem>>, vector<256x96xf32>,
    return
  }
  func.func @transform_0(%arg0: i32) -> (i32, i32) {
    %c0_i32 = arith.constant 0 : i32
    %c0_i32_0 = arith.constant 0 : i32
    return %arg0, %c0_i32 : i32, i32
  }
  func.func @transform_1(%arg0: i32) -> (i32, i32) {
    %c0_i32 = arith.constant 0 : i32
    %c0_i32_0 = arith.constant 0 : i32
    %c0_i32_1 = arith.constant 0 : i32
    return %c0_i32, %c0_i32_0 : i32, i32
  }
  func.func @transform_2(%arg0: i32) -> (i32, i32) {
    %c0_i32 = arith.constant 0 : i32
    %c0_i32_0 = arith.constant 0 : i32
    %c0_i32_1 = arith.constant 0 : i32
    return %c0_i32, %c0_i32_0 : i32, i32
  }
  func.func @transform_3(%arg0: i32) -> (i32, i32) {
    %c0_i32 = arith.constant 0 : i32
    %c0_i32_0 = arith.constant 0 : i32
    %c0_i32_1 = arith.constant 0 : i32
    return %c0_i32, %c0_i32_0 : i32, i32
  }
  func.func @transform_4(%arg0: i32) -> (i32, i32) {
    %c0_i32 = arith.constant 0 : i32
    %c0_i32_0 = arith.constant 0 : i32
    %c0_i32_1 = arith.constant 0 : i32
    return %c0_i32, %c0_i32_0 : i32, i32
  }
  func.func @transform_5(%arg0: i32) -> (i32, i32) {
    %c0_i32 = arith.constant 0 : i32
    %c0_i32_0 = arith.constant 0 : i32
    return %arg0, %c0_i32 : i32, i32
  }
}

</mosaic_0001>

<bundles_post_ra>
// kernel: tpu_custom_call.1
= control target key start
LH: loop header
LB: loop body
LE: loop exit
PB: predicated region body
PF: predicated region fallthrough
CT: control target
= control target key end

     0   :  { %s1523_s18 = smov 0   ;;  %s2924_s0 = inlined_call_operand.vmem [shape: f32[512,32], index: 0, kind: input, shape index: {}]   ;;  %s2925_s1 = inlined_call_operand.vmem [shape: f32[1,32], index: 1, kind: input, shape index: {}]   ;;  %s2926_s2 = inlined_call_operand.vmem [shape: f32[1,32], index: 2, kind: input, shape index: {}]   ;;  %s2927_s3 = inlined_call_operand.vmem [shape: f32[32,96], index: 3, kind: input, shape index: {}]   ;;  %s2928_s4 = inlined_call_operand.vmem [shape: f32[1,96], index: 4, kind: input, shape index: {}]   ;;  %s2929_s5 = inlined_call_operand.vmem [shape: f32[512,96], index: 5, kind: output, shape index: {}]  }
   0x1 LB: > { %s1350_s19 = sadd.s32 4294967295, %s1490_s18   ;;  %p1354_p0 = scmp.ge.s32.totalorder %s1490_s18, 1  ;;  %s1490_s18 = sphi %s1523_s18, %s15_s18  }
   0x2   : > { %p188_p1 = scmp.lt.s32.totalorder %s1490_s18, 3 }
   0x4   : > { %p189_p2 = pnand %p1354_p0, %p188_p1 }
   0x6   : > { %192 = sbr.rel (%p189_p2) target bundleno = 527 (0x20f), region = 40 }
   0xb   : > { %s1355_s20 = sshll.u32 %s1350_s19, 5  ;;  %vm260_vm0 = vcmask 261120  }
   0xc   : > { %p217_p3 = scmp.lt.s32.totalorder %s1355_s20, 63 }
   0xe   : > { %s3008_s20 = smov (!%p217_p3, %s1355_s20), 63 }
   0xf   : > { %s1356_s21 = sshll.u32 %s3008_s20, 3 }
  0x10   : > { %s1539_s24 = scalar_lea.vmem %s2924_s0, %s1356_s21  ;;  %s2823_s19 = scalar_lea.vmem %s2929_s5, %s1356_s21 }
  0x11   : > { %v1542_v0 = vld [vmem:[%s1539_s24 + $0x88] sm:$0xff]  ;;  %v1545_v1 = vld [vmem:[%s1539_s24 + $0x80] sm:$0xff]  ;;  %v1572_v12 = vld [vmem:[%s1539_s24 + $0x90] sm:$0xff] }
  0x12   : > { %v1548_v2 = vld [vmem:[%s1539_s24] sm:$0xff]  ;;  %v312_v3 = vsel %vm260_vm0, %v1542_v0, 0.0  ;;  %v309_v4 = vsel %vm260_vm0, %v1545_v1, 0.0  ;;  %v1557_v6 = vld [vmem:[%s1539_s24 + $0xc8] sm:$0xff]  ;;  %v315_v15 = vsel %vm260_vm0, %v1572_v12, 0.0  ;;  %v1587_v18 = vld [vmem:[%s1539_s24 + $0x50] sm:$0xff] }
  0x13   : > { %v261_v5 = vsel %vm260_vm0, %v1548_v2, 0.0  ;;  %313 = vadd.xlane.f32.xlu2 %v312_v3  ;;  %310 = vadd.xlane.f32.xlu0 %v309_v4  ;;  %v1560_v7 = vld [vmem:[%s1539_s24 + $0xc0] sm:$0xff]  ;;  %v336_v9 = vsel %vm260_vm0, %v1557_v6, 0.0  ;;  %v1575_v13 = vld [vmem:[%s1539_s24 + $0x8] sm:$0xff]  ;;  %v1590_v19 = vld [vmem:[%s1539_s24 + $0xd0] sm:$0xff]  ;;  %v291_v21 = vsel %vm260_vm0, %v1587_v18, 0.0 }
  0x14   : > { %262 = vadd.xlane.f32.xlu1 %v261_v5  ;;  %v1563_v8 = vld [vmem:[%s1539_s24 + $0x40] sm:$0xff]  ;;  %v333_v10 = vsel %vm260_vm0, %v1560_v7, 0.0  ;;  %v1578_v14 = vld [vmem:[%s1539_s24 + $0x48] sm:$0xff]  ;;  %v264_v16 = vsel %vm260_vm0, %v1575_v13, 0.0  ;;  %v1593_v20 = vld [vmem:[%s1539_s24 + $0x10] sm:$0xff]  ;;  %v339_v22 = vsel %vm260_vm0, %v1590_v19, 0.0 }
  0x15   : > { %v285_v11 = vsel %vm260_vm0, %v1563_v8, 0.0  ;;  %v288_v17 = vsel %vm260_vm0, %v1578_v14, 0.0  ;;  %v267_v23 = vsel %vm260_vm0, %v1593_v20, 0.0  ;;  %v1602_v24 = vld [vmem:[%s1539_s24 + $0x18] sm:$0xff]  ;;  %v1617_v30 = vld [vmem:[%s1539_s24 + $0xe0] sm:$0xff]  ;;  %v1632_v36 = vld [vmem:[%s1539_s24 + $0xa8] sm:$0xff] }
  0x16   : > { %v1605_v25 = vld [vmem:[%s1539_s24 + $0x98] sm:$0xff]  ;;  %v270_v27 = vsel %vm260_vm0, %v1602_v24, 0.0  ;;  %v1623_v32 = vld [vmem:[%s1539_s24 + $0xa0] sm:$0xff]  ;;  %v345_v33 = vsel %vm260_vm0, %v1617_v30, 0.0  ;;  %v324_v39 = vsel %vm260_vm0, %v1632_v36, 0.0  ;;  %v1647_v42 = vld [vmem:[%s1539_s24 + $0x68] sm:$0xff] }
  0x17   : > { %v1608_v26 = vld [vmem:[%s1539_s24 + $0xd8] sm:$0xff]  ;;  %v318_v28 = vsel %vm260_vm0, %v1605_v25, 0.0  ;;  %v321_v35 = vsel %vm260_vm0, %v1623_v32, 0.0  ;;  %v1635_v37 = vld [vmem:[%s1539_s24 + $0x20] sm:$0xff]  ;;  %v1650_v43 = vld [vmem:[%s1539_s24 + $0xe8] sm:$0xff]  ;;  %v300_v45 = vsel %vm260_vm0, %v1647_v42, 0.0 }
  0x18   : > { %v342_v29 = vsel %vm260_vm0, %v1608_v26, 0.0  ;;  %v1620_v31 = vld [vmem:[%s1539_s24 + $0x58] sm:$0xff]  ;;  %v1638_v38 = vld [vmem:[%s1539_s24 + $0x60] sm:$0xff]  ;;  %v273_v40 = vsel %vm260_vm0, %v1635_v37, 0.0  ;;  %v1653_v44 = vld [vmem:[%s1539_s24 + $0x28] sm:$0xff]  ;;  %v348_v46 = vsel %vm260_vm0, %v1650_v43, 0.0 }
  0x19   : > { %v294_v34 = vsel %vm260_vm0, %v1620_v31, 0.0  ;;  %v297_v41 = vsel %vm260_vm0, %v1638_v38, 0.0  ;;  %v276_v47 = vsel %vm260_vm0, %v1653_v44, 0.0  ;;  %v1662_v48 = vld [vmem:[%s1539_s24 + $0xb0] sm:$0xff]  ;;  %v1677_v54 = vld [vmem:[%s1539_s24 + $0xf8] sm:$0xff]  ;;  %v1492_v3 = vmov 32.0  }
  0x1a   : > { %v1665_v49 = vld [vmem:[%s1539_s24 + $0xf0] sm:$0xff]  ;;  %v327_v51 = vsel %vm260_vm0, %v1662_v48, 0.0  ;;  %v1683_v56 = vld [vmem:[%s1539_s24 + $0xb8] sm:$0xff]  ;;  %v354_v57 = vsel %vm260_vm0, %v1677_v54, 0.0  ;;  %1417 = vrcp.f32 %v1492_v3 }
  0x1b   : > { %337 = vadd.xlane.f32.xlu2 %v336_v9  ;;  %334 = vadd.xlane.f32.xlu0 %v333_v10  ;;  %v1668_v50 = vld [vmem:[%s1539_s24 + $0x70] sm:$0xff]  ;;  %v351_v52 = vsel %vm260_vm0, %v1665_v49, 0.0  ;;  %v330_v59 = vsel %vm260_vm0, %v1683_v56, 0.0  ;;  %v1692_v60 = vld [vmem:[%s1539_s24 + $0x38] sm:$0xff] }
  0x1c   : > { %286 = vadd.xlane.f32.xlu1 %v285_v11  ;;  %v303_v53 = vsel %vm260_vm0, %v1668_v50, 0.0  ;;  %v1680_v55 = vld [vmem:[%s1539_s24 + $0x30] sm:$0xff]  ;;  %v1695_v61 = vld [vmem:[%s1539_s24 + $0x78] sm:$0xff]  ;;  %v282_v62 = vsel %vm260_vm0, %v1692_v60, 0.0 }
  0x1d   : > { %v279_v58 = vsel %vm260_vm0, %v1680_v55, 0.0  ;;  %v306_v63 = vsel %vm260_vm0, %v1695_v61, 0.0 }
  0x20   : > { %v1418_v4 = vpop.eup %1417 }
  0x21   : > { %v358_v5 = vmul.f32 32.0, %v1418_v4  ;;  %vm362_vm1 = vweird.f32 %v1418_v4 }
  0x23   : > { %316 = vadd.xlane.f32.xlu2 %v315_v15  ;;  %265 = vadd.xlane.f32.xlu0 %v264_v16  ;;  %v359_v9 = vsub.f32 1.0, %v358_v5 }
  0x24   : > { %289 = vadd.xlane.f32.xlu1 %v288_v17 }
  0x25   : > { %v360_v10 = vmul.f32 %v1418_v4, %v359_v9 }
  0x27   : > { %v361_v11 = vadd.f32 %v1418_v4, %v360_v10 }
  0x29   : > { %v1701_v15 = vsel %vm362_vm1, %v1418_v4, %v361_v11 }
  0x2b   : > { %292 = vadd.xlane.f32.xlu2 %v291_v21  ;;  %340 = vadd.xlane.f32.xlu0 %v339_v22 }
  0x2c   : > { %268 = vadd.xlane.f32.xlu1 %v267_v23 }
  0x33   : > { %271 = vadd.xlane.f32.xlu2 %v270_v27  ;;  %319 = vadd.xlane.f32.xlu0 %v318_v28 }
  0x34   : > { %343 = vadd.xlane.f32.xlu1 %v342_v29 }
  0x3b   : > { %346 = vadd.xlane.f32.xlu2 %v345_v33  ;;  %295 = vadd.xlane.f32.xlu0 %v294_v34 }
  0x3c   : > { %322 = vadd.xlane.f32.xlu1 %v321_v35 }
  0x43   : > { %325 = vadd.xlane.f32.xlu2 %v324_v39  ;;  %274 = vadd.xlane.f32.xlu0 %v273_v40 }
  0x44   : > { %298 = vadd.xlane.f32.xlu1 %v297_v41 }
  0x4b   : > { %301 = vadd.xlane.f32.xlu2 %v300_v45  ;;  %349 = vadd.xlane.f32.xlu0 %v348_v46 }
  0x4c   : > { %277 = vadd.xlane.f32.xlu1 %v276_v47 }
  0x53   : > { %328 = vadd.xlane.f32.xlu2 %v327_v51  ;;  %352 = vadd.xlane.f32.xlu0 %v351_v52 }
  0x54   : > { %304 = vadd.xlane.f32.xlu1 %v303_v53 }
  0x5b   : > { %355 = vadd.xlane.f32.xlu2 %v354_v57  ;;  %280 = vadd.xlane.f32.xlu0 %v279_v58 }
  0x5c   : > { %331 = vadd.xlane.f32.xlu1 %v330_v59 }
  0x63   : > { %283 = vadd.xlane.f32.xlu2 %v282_v62  ;;  %307 = vadd.xlane.f32.xlu0 %v306_v63 }
  0x86   : > { %v314_v16 = vpop.xlane.xlu2 %313  ;;  %v311_v17 = vpop.xlane.xlu0 %310 }
  0x87   : > { %v380_v21 = vmul.f32 %v1701_v15, %v311_v17  ;;  %v263_v22 = vpop.xlane.xlu1 %262  ;;  %v381_v46 = vmul.f32 %v1701_v15, %v314_v16 }
  0x88   : > { %v364_v41 = vmul.f32 %v1701_v15, %v263_v22 }
  0x89   : > { %v1705_v23 = vsub.f32 %v1545_v1, %v380_v21  ;;  %v1736_v58 = vsub.f32 %v1542_v0, %v381_v46 }
  0x8b   : > { %v444_v27 = vmul.f32 %v1705_v23, %v1705_v23  ;;  %v445_v0 = vmul.f32 %v1736_v58, %v1736_v58 }
  0x8d   : > { %v508_v28 = vsel %vm260_vm0, %v444_v27, 0.0  ;;  %v511_v21 = vsel %vm260_vm0, %v445_v0, 0.0 }
  0x8e   : > { %v338_v29 = vpop.xlane.xlu2 %337  ;;  %v335_v33 = vpop.xlane.xlu0 %334  ;;  %509 = vadd.xlane.f32.xlu0 %v508_v28 }
  0x8f   : > { %v389_v34 = vmul.f32 %v1701_v15, %v338_v29  ;;  %v388_v35 = vmul.f32 %v1701_v15, %v335_v33  ;;  %v287_v39 = vpop.xlane.xlu1 %286 }
  0x90   : > { %v372_v40 = vmul.f32 %v1701_v15, %v287_v39 }
  0x91   : > { %v1715_v1 = vsub.f32 %v1557_v6, %v389_v34  ;;  %v1718_v45 = vsub.f32 %v1560_v7, %v388_v35  ;;  %v1731_v6 = vsub.f32 %v1548_v2, %v364_v41 }
  0x92   : > { %v1722_v47 = vsub.f32 %v1563_v8, %v372_v40 }
  0x93   : > { %v453_v51 = vmul.f32 %v1715_v1, %v1715_v1  ;;  %v452_v52 = vmul.f32 %v1718_v45, %v1718_v45  ;;  %v428_v5 = vmul.f32 %v1731_v6, %v1731_v6 }
  0x94   : > { %v436_v53 = vmul.f32 %v1722_v47, %v1722_v47 }
  0x95   : > { %v535_v7 = vsel %vm260_vm0, %v453_v51, 0.0  ;;  %v532_v57 = vsel %vm260_vm0, %v452_v52, 0.0  ;;  %v460_v16 = vsel %vm260_vm0, %v428_v5, 0.0 }
  0x96   : > { %v317_v8 = vpop.xlane.xlu2 %316  ;;  %536 = vadd.xlane.f32.xlu0 %v535_v7  ;;  %v266_v59 = vpop.xlane.xlu0 %265  ;;  %533 = vadd.xlane.f32.xlu1 %v532_v57  ;;  %v484_v62 = vsel %vm260_vm0, %v436_v53, 0.0 }
  0x97   : > { %v365_v63 = vmul.f32 %v1701_v15, %v266_v59  ;;  %485 = vadd.xlane.f32.xlu2 %v484_v62  ;;  %v290_v3 = vpop.xlane.xlu1 %289  ;;  %v382_v29 = vmul.f32 %v1701_v15, %v317_v8 }
  0x98   : > { %v373_v2 = vmul.f32 %v1701_v15, %v290_v3 }
  0x99   : > { %v1742_v4 = vsub.f32 %v1575_v13, %v365_v63  ;;  %v1773_v41 = vsub.f32 %v1572_v12, %v382_v29 }
  0x9a   : > { %v1749_v9 = vsub.f32 %v1578_v14, %v373_v2 }
  0x9b   : > { %v429_v10 = vmul.f32 %v1742_v4, %v1742_v4  ;;  %v446_v12 = vmul.f32 %v1773_v41, %v1773_v41 }
  0x9c   : > { %v437_v14 = vmul.f32 %v1749_v9, %v1749_v9 }
  0x9d   : > { %v463_v11 = vsel %vm260_vm0, %v429_v10, 0.0 }
  0x9e   : > { %v293_v17 = vpop.xlane.xlu2 %292  ;;  %464 = vadd.xlane.f32.xlu0 %v463_v11  ;;  %v341_v13 = vpop.xlane.xlu0 %340  ;;  %461 = vadd.xlane.f32.xlu1 %v460_v16  ;;  %v487_v39 = vsel %vm260_vm0, %v437_v14, 0.0 }
  0x9f   : > { %v390_v22 = vmul.f32 %v1701_v15, %v341_v13  ;;  %512 = vadd.xlane.f32.xlu2 %v511_v21  ;;  %v269_v27 = vpop.xlane.xlu1 %268  ;;  %v374_v57 = vmul.f32 %v1701_v15, %v293_v17 }
  0xa0   : > { %v366_v28 = vmul.f32 %v1701_v15, %v269_v27 }
  0xa1   : > { %v1762_v33 = vsub.f32 %v1590_v19, %v390_v22  ;;  %v1793_v3 = vsub.f32 %v1587_v18, %v374_v57 }
  0xa2   : > { %v1765_v34 = vsub.f32 %v1593_v20, %v366_v28 }
  0xa3   : > { %v454_v35 = vmul.f32 %v1762_v33, %v1762_v33  ;;  %v438_v13 = vmul.f32 %v1793_v3, %v1793_v3 }
  0xa4   : > { %v430_v40 = vmul.f32 %v1765_v34, %v1765_v34 }
  0xa5   : > { %v538_v46 = vsel %vm260_vm0, %v454_v35, 0.0 }
  0xa6   : > { %v272_v51 = vpop.xlane.xlu2 %271  ;;  %v320_v52 = vpop.xlane.xlu0 %319  ;;  %488 = vadd.xlane.f32.xlu1 %v487_v39  ;;  %v466_v19 = vsel %vm260_vm0, %v430_v40, 0.0 }
  0xa7   : > { %v383_v20 = vmul.f32 %v1701_v15, %v320_v52  ;;  %539 = vadd.xlane.f32.xlu2 %v538_v46  ;;  %467 = vadd.xlane.f32.xlu0 %v466_v19  ;;  %v344_v53 = vpop.xlane.xlu1 %343  ;;  %v367_v17 = vmul.f32 %v1701_v15, %v272_v51 }
  0xa8   : > { %v391_v7 = vmul.f32 %v1701_v15, %v344_v53 }
  0xa9   : > { %v1781_v8 = vsub.f32 %v1605_v25, %v383_v20  ;;  %v514_v25 = vsel %vm260_vm0, %v446_v12, 0.0  ;;  %v1814_v14 = vsub.f32 %v1602_v24, %v367_v17 }
  0xaa   : > { %v1786_v59 = vsub.f32 %v1608_v26, %v391_v7 }
  0xab   : > { %v447_v62 = vmul.f32 %v1781_v8, %v1781_v8  ;;  %v431_v52 = vmul.f32 %v1814_v14, %v1814_v14 }
  0xac   : > { %v455_v63 = vmul.f32 %v1786_v59, %v1786_v59 }
  0xad   : > { %v517_v2 = vsel %vm260_vm0, %v447_v62, 0.0 }
  0xae   : > { %v347_v5 = vpop.xlane.xlu2 %346  ;;  %v296_v0 = vpop.xlane.xlu0 %295  ;;  %515 = vadd.xlane.f32.xlu1 %v514_v25  ;;  %v541_v10 = vsel %vm260_vm0, %v455_v63, 0.0 }
  0xaf   : > { %v375_v26 = vmul.f32 %v1701_v15, %v296_v0  ;;  %518 = vadd.xlane.f32.xlu2 %v517_v2  ;;  %542 = vadd.xlane.f32.xlu0 %v541_v10  ;;  %v323_v11 = vpop.xlane.xlu1 %322  ;;  %v392_v51 = vmul.f32 %v1701_v15, %v347_v5 }
  0xb0   : > { %v384_v16 = vmul.f32 %v1701_v15, %v323_v11 }
  0xb1   : > { %v1802_v18 = vsub.f32 %v1620_v31, %v375_v26  ;;  %v490_v31 = vsel %vm260_vm0, %v438_v13, 0.0  ;;  %v1835_v7 = vsub.f32 %v1617_v30, %v392_v51 }
  0xb2   : > { %v1807_v21 = vsub.f32 %v1623_v32, %v384_v16 }
  0xb3   : > { %v439_v22 = vmul.f32 %v1802_v18, %v1802_v18  ;;  %v456_v0 = vmul.f32 %v1835_v7, %v1835_v7 }
  0xb4   : > { %v448_v27 = vmul.f32 %v1807_v21, %v1807_v21 }
  0xb5   : > { %v493_v28 = vsel %vm260_vm0, %v439_v22, 0.0 }
  0xb6   : > { %v326_v29 = vpop.xlane.xlu2 %325  ;;  %v275_v35 = vpop.xlane.xlu0 %274  ;;  %491 = vadd.xlane.f32.xlu1 %v490_v31  ;;  %v520_v39 = vsel %vm260_vm0, %v448_v27, 0.0 }
  0xb7   : > { %v368_v32 = vmul.f32 %v1701_v15, %v275_v35  ;;  %494 = vadd.xlane.f32.xlu2 %v493_v28  ;;  %521 = vadd.xlane.f32.xlu0 %v520_v39  ;;  %v299_v40 = vpop.xlane.xlu1 %298  ;;  %v385_v5 = vmul.f32 %v1701_v15, %v326_v29 }
  0xb8   : > { %v376_v46 = vmul.f32 %v1701_v15, %v299_v40 }
  0xb9   : > { %v1823_v24 = vsub.f32 %v1635_v37, %v368_v32  ;;  %v469_v37 = vsel %vm260_vm0, %v431_v52, 0.0  ;;  %v1856_v16 = vsub.f32 %v1632_v36, %v385_v5 }
  0xba   : > { %v1828_v19 = vsub.f32 %v1638_v38, %v376_v46 }
  0xbb   : > { %v432_v20 = vmul.f32 %v1823_v24, %v1823_v24  ;;  %v449_v32 = vmul.f32 %v1856_v16, %v1856_v16 }
  0xbc   : > { %v440_v53 = vmul.f32 %v1828_v19, %v1828_v19 }
  0xbd   : > { %v472_v57 = vsel %vm260_vm0, %v432_v20, 0.0 }
  0xbe   : > { %v302_v12 = vpop.xlane.xlu2 %301  ;;  %v350_v62 = vpop.xlane.xlu0 %349  ;;  %470 = vadd.xlane.f32.xlu1 %v469_v37  ;;  %v496_v63 = vsel %vm260_vm0, %v440_v53, 0.0 }
  0xbf   : > { %v393_v38 = vmul.f32 %v1701_v15, %v350_v62  ;;  %473 = vadd.xlane.f32.xlu2 %v472_v57  ;;  %497 = vadd.xlane.f32.xlu0 %v496_v63  ;;  %v278_v2 = vpop.xlane.xlu1 %277  ;;  %v377_v36 = vmul.f32 %v1701_v15, %v302_v12 }
  0xc0   : > { %v369_v25 = vmul.f32 %v1701_v15, %v278_v2 }
  0xc1   : > { %v1844_v30 = vsub.f32 %v1650_v43, %v393_v38  ;;  %v544_v43 = vsel %vm260_vm0, %v456_v0, 0.0  ;;  %v1881_v52 = vsub.f32 %v1647_v42, %v377_v36 }
  0xc2   : > { %v1849_v10 = vsub.f32 %v1653_v44, %v369_v25 }
  0xc3   : > { %v457_v26 = vmul.f32 %v1844_v30, %v1844_v30  ;;  %v441_v62 = vmul.f32 %v1881_v52, %v1881_v52 }
  0xc4   : > { %v433_v11 = vmul.f32 %v1849_v10, %v1849_v10 }
  0xc5   : > { %v547_v17 = vsel %vm260_vm0, %v457_v26, 0.0  ;;  %v499_v5 = vsel %vm260_vm0, %v441_v62, 0.0 }
  0xc6   : > { %v329_v13 = vpop.xlane.xlu2 %328  ;;  %v353_v22 = vpop.xlane.xlu0 %352  ;;  %545 = vadd.xlane.f32.xlu1 %v544_v43  ;;  %v475_v27 = vsel %vm260_vm0, %v433_v11, 0.0 }
  0xc7   : > { %v386_v44 = vmul.f32 %v1701_v15, %v329_v13  ;;  %v394_v28 = vmul.f32 %v1701_v15, %v353_v22  ;;  %548 = vadd.xlane.f32.xlu2 %v547_v17  ;;  %476 = vadd.xlane.f32.xlu0 %v475_v27  ;;  %v305_v31 = vpop.xlane.xlu1 %304 }
  0xc8   : > { %v378_v29 = vmul.f32 %v1701_v15, %v305_v31 }
  0xc9   : > { %v1866_v35 = vsub.f32 %v1662_v48, %v386_v44  ;;  %v1869_v39 = vsub.f32 %v1665_v49, %v394_v28  ;;  %v523_v49 = vsel %vm260_vm0, %v449_v32, 0.0  ;;  %v1047_v32 = vld [vmem:[%s2927_s3 + $0x18] sm:$0xff] }
  0xca   : > { %v1878_v51 = vsub.f32 %v1668_v50, %v378_v29  ;;  %1394 = vmatpush.msra.mxu2 %v1047_v32  ;;  %1393 = vmatpush.msra.mxu1 %v1047_v32 }
  0xcb   : > { %2936 = vst [vmem:[#allocation2_spill] sm:$0xff] %v1869_v39  ;;  %v450_v40 = vmul.f32 %v1866_v35, %v1866_v35  ;;  %v458_v46 = vmul.f32 %v1869_v39, %v1869_v39  ;;  %1395 = vmatpush.msra.mxu3 %v1047_v32  ;;  %1160 = vmatpush.msra.mxu0 %v1047_v32 }
  0xcc   : > { %v442_v42 = vmul.f32 %v1878_v51, %v1878_v51 }
  0xcd   : > { %v526_v48 = vsel %vm260_vm0, %v450_v40, 0.0  ;;  %v550_v20 = vsel %vm260_vm0, %v458_v46, 0.0  ;;  %v1045_v40 = vld [vmem:[%s2927_s3 + $0x8] sm:$0xff] }
  0xce   : > { %v356_v53 = vpop.xlane.xlu2 %355  ;;  %v281_v57 = vpop.xlane.xlu0 %280  ;;  %524 = vadd.xlane.f32.xlu1 %v523_v49  ;;  %v502_v2 = vsel %vm260_vm0, %v442_v42, 0.0 }
  0xcf   : > { %v370_v37 = vmul.f32 %v1701_v15, %v281_v57  ;;  %527 = vadd.xlane.f32.xlu2 %v526_v48  ;;  %551 = vadd.xlane.f32.xlu0 %v550_v20  ;;  %v332_v12 = vpop.xlane.xlu1 %331  ;;  %v395_v43 = vmul.f32 %v1701_v15, %v356_v53  ;;  %v1044_v48 = vld [vmem:[%s2927_s3] sm:$0xff] }
  0xd0   : > { %v387_v50 = vmul.f32 %v1701_v15, %v332_v12 }
  0xd1   : > { %v1896_v38 = vsub.f32 %v1680_v55, %v370_v37  ;;  %v1920_v31 = vsub.f32 %v1677_v54, %v395_v43  ;;  %v1046_v54 = vld [vmem:[%s2927_s3 + $0x10] sm:$0xff] }
  0xd2   : > { %v1893_v63 = vsub.f32 %v1683_v56, %v387_v50  ;;  %1397 = vmatpush.msra.mxu2 %v1046_v54  ;;  %1396 = vmatpush.msra.mxu1 %v1046_v54 }
  0xd3   : > { %2938 = vst [vmem:[#allocation4_spill] sm:$0xff] %v1896_v38  ;;  %v434_v55 = vmul.f32 %v1896_v38, %v1896_v38  ;;  %1398 = vmatpush.msra.mxu3 %v1046_v54  ;;  %1161 = vmatpush.msra.mxu0 %v1046_v54 }
  0xd4   : > { %2937 = vst [vmem:[#allocation3_spill] sm:$0xff] %v1893_v63  ;;  %v451_v25 = vmul.f32 %v1893_v63, %v1893_v63  ;;  %1400 = vmatpush.msra.mxu2 %v1045_v40  ;;  %1399 = vmatpush.msra.mxu1 %v1045_v40 }
  0xd5   : > { %v478_v27 = vsel %vm260_vm0, %v434_v55, 0.0  ;;  %2941 = vst [vmem:[#allocation7_spill] sm:$0xff] %v1920_v31  ;;  %1401 = vmatpush.msra.mxu3 %v1045_v40  ;;  %1162 = vmatpush.msra.mxu0 %v1045_v40 }
  0xd6   : > { %v284_v0 = vpop.xlane.xlu2 %283  ;;  %v308_v26 = vpop.xlane.xlu0 %307  ;;  %500 = vadd.xlane.f32.xlu1 %v499_v5  ;;  %v529_v11 = vsel %vm260_vm0, %v451_v25, 0.0  ;;  %1403 = vmatpush.msra.mxu2 %v1044_v48 }
  0xd7   : > { %v371_v17 = vmul.f32 %v1701_v15, %v284_v0  ;;  %v379_v56 = vmul.f32 %v1701_v15, %v308_v26  ;;  %503 = vadd.xlane.f32.xlu2 %v502_v2  ;;  %530 = vadd.xlane.f32.xlu0 %v529_v11 }
  0xd8   : > { %1402 = vmatpush.msra.mxu1 %v1044_v48  ;;  %1404 = vmatpush.msra.mxu3 %v1044_v48 }
  0xd9   : > { %v1909_v13 = vsub.f32 %v1692_v60, %v371_v17  ;;  %v1912_v22 = vsub.f32 %v1695_v61, %v379_v56  ;;  %v459_v60 = vmul.f32 %v1920_v31, %v1920_v31  ;;  %1163 = vmatpush.msra.mxu0 %v1044_v48 }
  0xdb   : > { %2939 = vst [vmem:[#allocation5_spill] sm:$0xff] %v1909_v13  ;;  %v435_v44 = vmul.f32 %v1909_v13, %v1909_v13  ;;  %v443_v28 = vmul.f32 %v1912_v22, %v1912_v22  ;;  %v553_v61 = vsel %vm260_vm0, %v459_v60, 0.0 }
  0xdc   : > { %2940 = vst [vmem:[#allocation6_spill] sm:$0xff] %v1912_v22 }
  0xdd   : > { %v481_v29 = vsel %vm260_vm0, %v435_v44, 0.0  ;;  %v505_v36 = vsel %vm260_vm0, %v443_v28, 0.0 }
  0xde   : > { %479 = vadd.xlane.f32.xlu1 %v478_v27 }
  0xdf   : > { %482 = vadd.xlane.f32.xlu2 %v481_v29  ;;  %506 = vadd.xlane.f32.xlu0 %v505_v36 }
  0xe6   : > { %554 = vadd.xlane.f32.xlu1 %v553_v61 }
 0x101   : > { %v510_v46 = vpop.xlane.xlu0 %509 }
 0x102   : > { %v572_v49 = vmul.f32 %v510_v46, %v1701_v15 }
 0x104   : > { %v604_v20 = vadd.f32 1e-05, %v572_v49 }
 0x106   : > { %1419 = vrsqrt.f32 %v604_v20  ;;  %vm786_vm3 = vweird.f32 %v604_v20 }
 0x109   : > { %v537_v53 = vpop.xlane.xlu0 %536  ;;  %v534_v57 = vpop.xlane.xlu1 %533 }
 0x10a   : > { %v581_v37 = vmul.f32 %v537_v53, %v1701_v15  ;;  %v486_v12 = vpop.xlane.xlu2 %485  ;;  %v580_v50 = vmul.f32 %v534_v57, %v1701_v15 }
 0x10b   : > { %v564_v42 = vmul.f32 %v486_v12, %v1701_v15 }
 0x10c   : > { %v1420_v62 = vpop.eup %1419  ;;  %v1943_v2 = vadd.f32 1e-05, %v580_v50  ;;  %v1945_v5 = vadd.f32 1e-05, %v581_v37 }
 0x10d   : > { %v781_v25 = vmul.f32 %v1420_v62, %v604_v20  ;;  %v1947_v0 = vadd.f32 1e-05, %v564_v42  ;;  %vm787_vm2 = vweird.f32 %v1420_v62 }
 0x10e   : > { %vm788_vm4 = vmor %vm786_vm3, %vm787_vm2  ;;  %vm876_vm7 = vweird.f32 %v1945_v5  ;;  %vm866_vm11 = vweird.f32 %v1943_v2 }
 0x10f   : > { %v782_v26 = vmul.f32 %v1420_v62, %v781_v25  ;;  %1421 = vrsqrt.f32 %v1947_v0  ;;  %vm706_vm5 = vweird.f32 %v1947_v0 }
 0x110   : > { %1423 = vrsqrt.f32 %v1943_v2 }
 0x111   : > { %v783_v11 = vmul.f32 0.5, %v782_v26  ;;  %1425 = vrsqrt.f32 %v1945_v5  ;;  %v465_v17 = vpop.xlane.xlu0 %464  ;;  %v462_v56 = vpop.xlane.xlu1 %461 }
 0x112   : > { %v557_v55 = vmul.f32 %v465_v17, %v1701_v15  ;;  %v513_v43 = vpop.xlane.xlu2 %512  ;;  %v556_v27 = vmul.f32 %v462_v56, %v1701_v15  ;;  %v1985_v17 = vld [vmem:[%s2925_s1] ss:$0 sm:$0xff] }
 0x113   : > { %v784_v44 = vsub.f32 1.5, %v783_v11  ;;  %v573_v28 = vmul.f32 %v513_v43, %v1701_v15 }
 0x114   : > { %v1955_v29 = vadd.f32 1e-05, %v557_v55  ;;  %v1961_v32 = vadd.f32 1e-05, %v556_v27 }
 0x115   : > { %v1957_v36 = vpop.eup %1421  ;;  %v785_v60 = vmul.f32 %v1420_v62, %v784_v44  ;;  %v1959_v61 = vadd.f32 1e-05, %v573_v28 }
 0x116   : > { %v1963_v54 = vpop.eup %1423  ;;  %v701_v40 = vmul.f32 %v1957_v36, %v1947_v0  ;;  %1427 = vrsqrt.f32 %v1955_v29  ;;  %vm707_vm6 = vweird.f32 %v1957_v36  ;;  %vm636_vm13 = vweird.f32 %v1955_v29 }
 0x117   : > { %v1968_v46 = vpop.eup %1425  ;;  %v861_v48 = vmul.f32 %v1963_v54, %v1943_v2  ;;  %v789_v49 = vsel %vm788_vm4, %v1420_v62, %v785_v60  ;;  %1429 = vrsqrt.f32 %v1959_v61  ;;  %vm2029_vm8 = vmor %vm706_vm5, %vm707_vm6  ;;  %vm867_vm9 = vweird.f32 %v1963_v54 }
 0x118   : > { %v702_v53 = vmul.f32 %v1957_v36, %v701_v40  ;;  %1431 = vrsqrt.f32 %v1961_v32  ;;  %v871_v37 = vmul.f32 %v1968_v46, %v1945_v5  ;;  %v956_v11 = vmul.f32 %v789_v49, %v1705_v23  ;;  %vm2054_vm12 = vmor %vm866_vm11, %vm867_vm9 }
 0x119   : > { %v862_v57 = vmul.f32 %v1963_v54, %v861_v48  ;;  %v489_v20 = vpop.xlane.xlu1 %488  ;;  %vm877_vm10 = vweird.f32 %v1968_v46  ;;  %vm796_vm14 = vweird.f32 %v1959_v61  ;;  %vm626_vm15 = vweird.f32 %v1961_v32 }
 0x11a   : > { %v703_v12 = vmul.f32 0.5, %v702_v53  ;;  %v540_v50 = vpop.xlane.xlu2 %539  ;;  %v468_v42 = vpop.xlane.xlu0 %467  ;;  %v565_v25 = vmul.f32 %v489_v20, %v1701_v15  ;;  %v872_v28 = vmul.f32 %v1968_v46, %v871_v37  ;;  %v992_v53 = vmul.f32 %v1985_v17, %v956_v11  ;;  %vm2090_vm3 = vmor %vm876_vm7, %vm877_vm10 }
 0x11b   : > { %v582_v26 = vmul.f32 %v540_v50, %v1701_v15  ;;  %v558_v62 = vmul.f32 %v468_v42, %v1701_v15  ;;  %v863_v27 = vmul.f32 0.5, %v862_v57  ;;  %v2009_v57 = vld [vmem:[%s2926_s2] ss:$0 sm:$0xff] }
 0x11c   : > { %v1987_v56 = vpop.eup %1427  ;;  %v1989_v55 = vadd.f32 1e-05, %v565_v25  ;;  %v704_v43 = vsub.f32 1.5, %v703_v12  ;;  %v873_v25 = vmul.f32 0.5, %v872_v28  ;;  %v1028_v13 = vadd.f32 %v2009_v57, %v992_v53 }
 0x11d   : > { %v1991_v44 = vpop.eup %1429  ;;  %v1994_v60 = vadd.f32 1e-05, %v582_v26  ;;  %v1996_v40 = vadd.f32 1e-05, %v558_v62  ;;  %v631_v48 = vmul.f32 %v1987_v56, %v1955_v29  ;;  %v864_v12 = vsub.f32 1.5, %v863_v27 }
 0x11e   : > { %1433 = vrsqrt.f32 %v1989_v55  ;;  %v1999_v23 = vpop.eup %1431  ;;  %v791_v49 = vmul.f32 %v1991_v44, %v1959_v61  ;;  %v705_v37 = vmul.f32 %v1957_v36, %v704_v43  ;;  %1375 = vmatmul.msk.f32.vlgmr.msra.gmra.mxu2 %vm260_vm0, %v1028_v13  ;;  %v874_v0 = vsub.f32 1.5, %v873_v25 }
 0x11f   : > { %v621_v20 = vmul.f32 %v1999_v23, %v1961_v32  ;;  %1435 = vrsqrt.f32 %v1994_v60  ;;  %v632_v31 = vmul.f32 %v1987_v56, %v631_v48  ;;  %v865_v53 = vmul.f32 %v1963_v54, %v864_v12 }
 0x120   : > { %v792_v50 = vmul.f32 %v1991_v44, %v791_v49  ;;  %1437 = vrsqrt.f32 %v1996_v40  ;;  %v709_v49 = vsel %vm2029_vm8, %v1957_v36, %v705_v37  ;;  %vm797_vm1 = vweird.f32 %v1991_v44 }
 0x121   : > { %v516_v42 = vpop.xlane.xlu1 %515  ;;  %v622_v26 = vmul.f32 %v1999_v23, %v621_v20  ;;  %v633_v36 = vmul.f32 0.5, %v632_v31  ;;  %v948_v25 = vmul.f32 %v709_v49, %v1722_v47  ;;  %v869_v31 = vsel %vm2054_vm12, %v1963_v54, %v865_v53  ;;  %vm2108_vm5 = vmor %vm796_vm14, %vm797_vm1 }
 0x122   : > { %v519_v62 = vpop.xlane.xlu2 %518  ;;  %v543_v11 = vpop.xlane.xlu0 %542  ;;  %v574_v48 = vmul.f32 %v516_v42, %v1701_v15  ;;  %v793_v20 = vmul.f32 0.5, %v792_v50  ;;  %v964_v53 = vmul.f32 %v869_v31, %v1718_v45  ;;  %vm627_vm2 = vweird.f32 %v1999_v23 }
 0x123   : > { %v575_v27 = vmul.f32 %v519_v62, %v1701_v15  ;;  %v583_v28 = vmul.f32 %v543_v11, %v1701_v15  ;;  %v623_v38 = vmul.f32 0.5, %v622_v26  ;;  %v2070_v26 = vmul.f32 %v1968_v46, %v874_v0  ;;  %vm2132_vm6 = vmor %vm626_vm15, %vm627_vm2 }
 0x124   : > { %v2022_v22 = vpop.eup %1433  ;;  %v2050_v37 = vadd.f32 1e-05, %v574_v48  ;;  %v794_v2 = vsub.f32 1.5, %v793_v20  ;;  %v634_v47 = vsub.f32 1.5, %v633_v36  ;;  %v1000_v31 = vmul.f32 %v1985_v17, %v964_v53 }
 0x125   : > { %v711_v62 = vmul.f32 %v2022_v22, %v1989_v55  ;;  %v2044_v63 = vadd.f32 1e-05, %v583_v28  ;;  %v2046_v11 = vpop.eup %1435  ;;  %v2061_v42 = vadd.f32 1e-05, %v575_v27  ;;  %v624_v43 = vsub.f32 1.5, %v623_v38 }
 0x126   : > { %v2052_v12 = vpop.eup %1437  ;;  %v881_v50 = vmul.f32 %v2046_v11, %v1994_v60  ;;  %v984_v38 = vmul.f32 %v1985_v17, %v948_v25  ;;  %v795_v20 = vmul.f32 %v1991_v44, %v794_v2  ;;  %v2098_v2 = vmul.f32 %v1987_v56, %v634_v47 }
 0x127   : > { %v712_v28 = vmul.f32 %v2022_v22, %v711_v62  ;;  %1439 = vrsqrt.f32 %v2044_v63  ;;  %v641_v54 = vmul.f32 %v2052_v12, %v1996_v40  ;;  %vm637_vm4 = vweird.f32 %v1987_v56 }
 0x128   : > { %v882_v49 = vmul.f32 %v2046_v11, %v881_v50  ;;  %1441 = vrsqrt.f32 %v2050_v37  ;;  %v625_v50 = vmul.f32 %v1999_v23, %v624_v43  ;;  %v1020_v25 = vadd.f32 %v2009_v57, %v984_v38  ;;  %vm2152_vm8 = vmor %vm636_vm13, %vm637_vm4 }
 0x129   : > { %1443 = vrsqrt.f32 %v2061_v42  ;;  %v492_v36 = vpop.xlane.xlu1 %491  ;;  %v713_v45 = vmul.f32 0.5, %v712_v28  ;;  %v1036_v28 = vadd.f32 %v2009_v57, %v1000_v31  ;;  %v879_v61 = vsel %vm2090_vm3, %v1968_v46, %v2070_v26 }
 0x12a   : > { %v495_v27 = vpop.xlane.xlu2 %494  ;;  %v522_v48 = vpop.xlane.xlu0 %521  ;;  %1367 = vmatmul.msk.f32.vlgmr.msra.gmra.mxu1 %vm260_vm0, %v1020_v25  ;;  %v799_v53 = vsel %vm2108_vm5, %v1991_v44, %v795_v20  ;;  %vm886_vm7 = vweird.f32 %v1994_v60  ;;  %v629_v46 = vsel %vm2132_vm6, %v1999_v23, %v625_v50  ;;  %vm646_vm9 = vweird.f32 %v1996_v40 }
 0x12b   : > { %v567_v0 = vmul.f32 %v495_v27, %v1701_v15  ;;  %v576_v62 = vmul.f32 %v522_v48, %v1701_v15  ;;  %v883_v27 = vmul.f32 0.5, %v882_v49  ;;  %v642_v48 = vmul.f32 %v2052_v12, %v641_v54  ;;  %1383 = vmatmul.msk.f32.vlgmr.msra.gmra.mxu3 %vm260_vm0, %v1036_v28 }
 0x12c   : > { %v566_v49 = vmul.f32 %v492_v36, %v1701_v15  ;;  %v714_v44 = vsub.f32 1.5, %v713_v45  ;;  %vm716_vm10 = vweird.f32 %v1989_v55  ;;  %vm717_vm11 = vweird.f32 %v2022_v22 }
 0x12d   : > { %v2102_v5 = vpop.eup %1439  ;;  %v2114_v47 = vadd.f32 1e-05, %v567_v0  ;;  %v2116_v38 = vadd.f32 1e-05, %v576_v62  ;;  %v643_v20 = vmul.f32 0.5, %v642_v48  ;;  %v884_v50 = vsub.f32 1.5, %v883_v27  ;;  %vm2189_vm14 = vmor %vm716_vm10, %vm717_vm11 }
 0x12e   : > { %v2119_v54 = vpop.eup %1441  ;;  %v891_v62 = vmul.f32 %v2102_v5, %v2044_v63  ;;  %v2164_v29 = vadd.f32 1e-05, %v566_v49  ;;  %v940_v48 = vmul.f32 %v629_v46, %v1731_v6  ;;  %v957_v43 = vmul.f32 %v799_v53, %v1736_v58 }
 0x12f   : > { %v2139_v36 = vpop.eup %1443  ;;  %v801_v26 = vmul.f32 %v2119_v54, %v2050_v37  ;;  %1445 = vrsqrt.f32 %v2114_v47  ;;  %v715_v28 = vmul.f32 %v2022_v22, %v714_v44  ;;  %v965_v27 = vmul.f32 %v879_v61, %v1715_v1 }
 0x130   : > { %1447 = vrsqrt.f32 %v2116_v38  ;;  %v811_v25 = vmul.f32 %v2139_v36, %v2061_v42  ;;  %v892_v31 = vmul.f32 %v2102_v5, %v891_v62  ;;  %vm887_vm12 = vweird.f32 %v2046_v11 }
 0x131   : > { %v802_v0 = vmul.f32 %v2119_v54, %v801_v26  ;;  %1449 = vrsqrt.f32 %v2164_v29  ;;  %v644_v49 = vsub.f32 1.5, %v643_v20  ;;  %v976_v13 = vmul.f32 %v1985_v17, %v940_v48  ;;  %v471_v46 = vpop.xlane.xlu1 %470  ;;  %vm2216_vm1 = vmor %vm886_vm7, %vm887_vm12 }
 0x132   : > { %v474_v23 = vpop.xlane.xlu2 %473  ;;  %v498_v45 = vpop.xlane.xlu0 %497  ;;  %v993_v39 = vmul.f32 %v1985_v17, %v957_v43  ;;  %vm647_vm13 = vweird.f32 %v2052_v12  ;;  %v1001_v6 = vmul.f32 %v1985_v17, %v965_v27  ;;  %v885_v1 = vmul.f32 %v2046_v11, %v884_v50 }
 0x133   : > { %v560_v58 = vmul.f32 %v474_v23, %v1701_v15  ;;  %v568_v53 = vmul.f32 %v498_v45, %v1701_v15  ;;  %v812_v44 = vmul.f32 %v2139_v36, %v811_v25  ;;  %v893_v26 = vmul.f32 0.5, %v892_v31  ;;  %vm2235_vm3 = vmor %vm646_vm9, %vm647_vm13 }
 0x134   : > { %vm896_vm15 = vweird.f32 %v2044_v63  ;;  %v719_v23 = vsel %vm2189_vm14, %v2022_v22, %v715_v28  ;;  %v803_v50 = vmul.f32 0.5, %v802_v0  ;;  %v1012_v45 = vadd.f32 %v2009_v57, %v976_v13 }
 0x135   : > { %v2178_v62 = vpop.eup %1445  ;;  %v1029_v55 = vadd.f32 %v2009_v57, %v993_v39  ;;  %v2203_v48 = vmul.f32 %v2052_v12, %v644_v49  ;;  %v1037_v43 = vadd.f32 %v2009_v57, %v1001_v6  ;;  %vm897_vm2 = vweird.f32 %v2102_v5 }
 0x136   : > { %v2195_v20 = vpop.eup %1447  ;;  %v731_v25 = vmul.f32 %v2178_v62, %v2114_v47  ;;  %1359 = vmatmul.msk.f32.vlgmr.msra.gmra.mxu0 %vm260_vm0, %v1012_v45  ;;  %v2223_v39 = vadd.f32 1e-05, %v560_v58  ;;  %v2225_v13 = vadd.f32 1e-05, %v568_v53  ;;  %v559_v28 = vmul.f32 %v471_v46, %v1701_v15 }
 0x137   : > { %v821_v31 = vmul.f32 %v2195_v20, %v2116_v38  ;;  %v2210_v27 = vpop.eup %1449  ;;  %1376 = vmatmul.msk.f32.gmra.mxu2 %vm260_vm0, %v1029_v55  ;;  %v889_v60 = vsel %vm2216_vm1, %v2046_v11, %v885_v1  ;;  %v813_v49 = vmul.f32 0.5, %v812_v44  ;;  %v894_v6 = vsub.f32 1.5, %v893_v26  ;;  %1384 = vmatmul.msk.f32.gmra.mxu3 %vm260_vm0, %v1037_v43 }
 0x138   : > { %vm806_vm4 = vweird.f32 %v2050_v37  ;;  %v721_v58 = vmul.f32 %v2210_v27, %v2164_v29  ;;  %v804_v46 = vsub.f32 1.5, %v803_v50  ;;  %vm807_vm5 = vweird.f32 %v2119_v54 }
 0x139   : > { %1451 = vrsqrt.f32 %v2223_v39  ;;  %v2245_v40 = vadd.f32 1e-05, %v559_v28  ;;  %v732_v1 = vmul.f32 %v2178_v62, %v731_v25  ;;  %v822_v61 = vmul.f32 %v2195_v20, %v821_v31  ;;  %vm2306_vm12 = vmor %vm806_vm4, %vm807_vm5 }
 0x13a   : > { %v549_v53 = vpop.xlane.xlu2 %548  ;;  %v477_v11 = vpop.xlane.xlu0 %476  ;;  %v722_v44 = vmul.f32 %v2210_v27, %v721_v58  ;;  %1453 = vrsqrt.f32 %v2225_v13  ;;  %v649_v26 = vsel %vm2235_vm3, %v2052_v12, %v2203_v48  ;;  %v2960_v50 = vsel %vm2152_vm8, %v1987_v56, %v2098_v2  ;;  %vm2275_vm8 = vmor %vm896_vm15, %vm897_vm2 }
 0x13b   : > { %1455 = vrsqrt.f32 %v2245_v40  ;;  %v941_v45 = vmul.f32 %v2960_v50, %v1742_v4  ;;  %v949_v55 = vmul.f32 %v719_v23, %v1749_v9  ;;  %v814_v25 = vsub.f32 1.5, %v813_v49  ;;  %v546_v56 = vpop.xlane.xlu1 %545 }
 0x13c   : > { %vm816_vm6 = vweird.f32 %v2061_v42  ;;  %vm817_vm7 = vweird.f32 %v2139_v36  ;;  %v895_v31 = vmul.f32 %v2102_v5, %v894_v6  ;;  %v723_v43 = vmul.f32 0.5, %v722_v44 }
 0x13d   : > { %v966_v12 = vmul.f32 %v889_v60, %v1762_v33  ;;  %v977_v48 = vmul.f32 %v1985_v17, %v941_v45  ;;  %v985_v32 = vmul.f32 %v1985_v17, %v949_v55  ;;  %v585_v22 = vmul.f32 %v549_v53, %v1701_v15  ;;  %vm2345_vm15 = vmor %vm816_vm6, %vm817_vm7 }
 0x13e   : > { %v561_v4 = vmul.f32 %v477_v11, %v1701_v15  ;;  %v805_v2 = vmul.f32 %v2119_v54, %v804_v46  ;;  %v733_v33 = vmul.f32 0.5, %v732_v1  ;;  %v823_v23 = vmul.f32 0.5, %v822_v61 }
 0x13f   : > { %v1002_v28 = vmul.f32 %v1985_v17, %v966_v12  ;;  %v2281_v60 = vpop.eup %1451  ;;  %v1013_v0 = vadd.f32 %v2009_v57, %v977_v48  ;;  %v1021_v49 = vadd.f32 %v2009_v57, %v985_v32  ;;  %v2285_v6 = vadd.f32 1e-05, %v585_v22 }
 0x140   : > { %v2287_v58 = vadd.f32 1e-05, %v561_v4  ;;  %v2289_v63 = vpop.eup %1453  ;;  %v2292_v53 = vmul.f32 %v2139_v36, %v814_v25  ;;  %vm736_vm9 = vweird.f32 %v2114_v47  ;;  %vm737_vm10 = vweird.f32 %v2178_v62 }
 0x141   : > { %vm826_vm11 = vweird.f32 %v2116_v38  ;;  %v2297_v46 = vpop.eup %1455  ;;  %v899_v11 = vsel %vm2275_vm8, %v2102_v5, %v895_v31  ;;  %v724_v61 = vsub.f32 1.5, %v723_v43  ;;  %1360 = vmatmul.msk.f32.gmra.mxu0 %vm260_vm0, %v1013_v0  ;;  %1368 = vmatmul.msk.f32.gmra.mxu1 %vm260_vm0, %v1021_v49  ;;  %v1038_v44 = vadd.f32 %v2009_v57, %v1002_v28  ;;  %vm2388_vm4 = vmor %vm736_vm9, %vm737_vm10 }
 0x142   : > { %1457 = vrsqrt.f32 %v2285_v6  ;;  %v809_v5 = vsel %vm2306_vm12, %v2119_v54, %v805_v2  ;;  %v661_v37 = vmul.f32 %v2281_v60, %v2223_v39  ;;  %v741_v50 = vmul.f32 %v2289_v63, %v2225_v13  ;;  %v528_v55 = vpop.xlane.xlu2 %527  ;;  %v552_v43 = vpop.xlane.xlu0 %551 }
 0x143   : > { %v651_v45 = vmul.f32 %v2297_v46, %v2245_v40  ;;  %v734_v25 = vsub.f32 1.5, %v733_v33  ;;  %v824_v31 = vsub.f32 1.5, %v823_v23  ;;  %vm827_vm13 = vweird.f32 %v2195_v20  ;;  %1385 = vmatmul.msk.f32.gmra.mxu3 %vm260_vm0, %v1038_v44  ;;  %v525_v49 = vpop.xlane.xlu1 %524 }
 0x144   : > { %1459 = vrsqrt.f32 %v2287_v58  ;;  %vm727_vm14 = vweird.f32 %v2210_v27  ;;  %v584_v12 = vmul.f32 %v546_v56, %v1701_v15  ;;  %v942_v48 = vmul.f32 %v649_v26, %v1765_v34  ;;  %vm2361_vm1 = vmor %vm826_vm11, %vm827_vm13 }
 0x145   : > { %v652_v54 = vmul.f32 %v2297_v46, %v651_v45  ;;  %v725_v32 = vmul.f32 %v2210_v27, %v724_v61  ;;  %v958_v22 = vmul.f32 %v809_v5, %v1773_v41  ;;  %v967_v4 = vmul.f32 %v899_v11, %v1786_v59 }
 0x146   : > { %v578_v9 = vmul.f32 %v528_v55, %v1701_v15  ;;  %v662_v2 = vmul.f32 %v2281_v60, %v661_v37  ;;  %v742_v33 = vmul.f32 %v2289_v63, %v741_v50  ;;  %v2336_v23 = vadd.f32 1e-05, %v584_v12 }
 0x147   : > { %v978_v28 = vmul.f32 %v1985_v17, %v942_v48  ;;  %v2350_v41 = vmul.f32 %v2178_v62, %v734_v25  ;;  %v2353_v59 = vmul.f32 %v2195_v20, %v824_v31  ;;  %v994_v26 = vmul.f32 %v1985_v17, %v958_v22 }
 0x148   : > { %v2339_v0 = vpop.eup %1457  ;;  %v1003_v56 = vmul.f32 %v1985_v17, %v967_v4  ;;  %vm726_vm2 = vweird.f32 %v2164_v29  ;;  %v653_v11 = vmul.f32 0.5, %v652_v54  ;;  %v2368_v61 = vadd.f32 1e-05, %v578_v9 }
 0x149   : > { %v911_v1 = vmul.f32 %v2339_v0, %v2285_v6  ;;  %v819_v5 = vsel %vm2345_vm15, %v2139_v36, %v2292_v53  ;;  %vm2378_vm3 = vmor %vm726_vm2, %vm727_vm14  ;;  %1461 = vrsqrt.f32 %v2336_v23  ;;  %v1014_v29 = vadd.f32 %v2009_v57, %v978_v28 }
 0x14a   : > { %v2370_v44 = vpop.eup %1459  ;;  %v729_v36 = vsel %vm2378_vm3, %v2210_v27, %v725_v32  ;;  %v663_v53 = vmul.f32 0.5, %v662_v2  ;;  %v743_v50 = vmul.f32 0.5, %v742_v33  ;;  %vm746_vm5 = vweird.f32 %v2225_v13  ;;  %v504_v12 = vpop.xlane.xlu2 %503 }
 0x14b   : > { %vm656_vm6 = vweird.f32 %v2245_v40  ;;  %v671_v45 = vmul.f32 %v2370_v44, %v2287_v58  ;;  %v739_v47 = vsel %vm2388_vm4, %v2178_v62, %v2350_v41  ;;  %v829_v55 = vsel %vm2361_vm1, %v2195_v20, %v2353_v59  ;;  %1361 = vmatmul.msk.f32.gmra.mxu0 %vm260_vm0, %v1014_v29  ;;  %v531_v4 = vpop.xlane.xlu0 %530 }
 0x14c   : > { %v1030_v27 = vadd.f32 %v2009_v57, %v994_v26  ;;  %v1039_v25 = vadd.f32 %v2009_v57, %v1003_v56  ;;  %vm666_vm7 = vweird.f32 %v2223_v39  ;;  %vm667_vm8 = vweird.f32 %v2281_v60 }
 0x14d   : > { %v654_v31 = vsub.f32 1.5, %v653_v11  ;;  %v912_v54 = vmul.f32 %v2339_v0, %v911_v1  ;;  %1463 = vrsqrt.f32 %v2368_v61  ;;  %vm657_vm9 = vweird.f32 %v2297_v46  ;;  %vm2490_vm2 = vmor %vm666_vm7, %vm667_vm8 }
 0x14e   : > { %1377 = vmatmul.msk.f32.gmra.mxu2 %vm260_vm0, %v1030_v27  ;;  %1386 = vmatmul.msk.f32.gmra.mxu3 %vm260_vm0, %v1039_v25  ;;  %v586_v48 = vmul.f32 %v552_v43, %v1701_v15  ;;  %v577_v32 = vmul.f32 %v525_v49, %v1701_v15  ;;  %v950_v22 = vmul.f32 %v729_v36, %v1793_v3  ;;  %v664_v9 = vsub.f32 1.5, %v663_v53  ;;  %vm2452_vm12 = vmor %vm656_vm6, %vm657_vm9 }
 0x14f   : > { %v744_v2 = vsub.f32 1.5, %v743_v50  ;;  %v672_v33 = vmul.f32 %v2370_v44, %v671_v45  ;;  %v959_v28 = vmul.f32 %v819_v5, %v1781_v8  ;;  %v2422_v34 = vpop.eup %1461  ;;  %v570_v43 = vmul.f32 %v504_v12, %v1701_v15  ;;  %v501_v5 = vpop.xlane.xlu1 %500 }
 0x150   : > { %v2424_v26 = vadd.f32 1e-05, %v586_v48  ;;  %v2426_v56 = vadd.f32 1e-05, %v577_v32  ;;  %v986_v11 = vmul.f32 %v1985_v17, %v950_v22  ;;  %v655_v49 = vmul.f32 %v2297_v46, %v654_v31 }
 0x151   : > { %v913_v3 = vmul.f32 0.5, %v912_v54  ;;  %v901_v1 = vmul.f32 %v2422_v34, %v2336_v23  ;;  %v579_v38 = vmul.f32 %v531_v4, %v1701_v15  ;;  %vm747_vm10 = vweird.f32 %v2289_v63 }
 0x152   : > { %vm916_vm11 = vweird.f32 %v2285_v6  ;;  %1465 = vrsqrt.f32 %v2424_v26  ;;  %v1022_v8 = vadd.f32 %v2009_v57, %v986_v11  ;;  %v2441_v36 = vmul.f32 %v2281_v60, %v664_v9  ;;  %vm2472_vm13 = vmor %vm746_vm5, %vm747_vm10  ;;  %v483_v41 = vpop.xlane.xlu2 %482 }
 0x153   : > { %v2438_v29 = vpop.eup %1463  ;;  %v2444_v53 = vmul.f32 %v2289_v63, %v744_v2  ;;  %v902_v50 = vmul.f32 %v2422_v34, %v901_v1  ;;  %1467 = vrsqrt.f32 %v2426_v56  ;;  %v673_v27 = vmul.f32 0.5, %v672_v33 }
 0x154   : > { %v841_v25 = vmul.f32 %v2438_v29, %v2368_v61  ;;  %1369 = vmatmul.msk.f32.gmra.mxu1 %vm260_vm0, %v1022_v8  ;;  %v995_v31 = vmul.f32 %v1985_v17, %v959_v28  ;;  %v2460_v54 = vadd.f32 1e-05, %v570_v43  ;;  %v659_v12 = vsel %vm2452_vm12, %v2297_v46, %v655_v49 }
 0x155   : > { %v914_v48 = vsub.f32 1.5, %v913_v3  ;;  %v2465_v40 = vadd.f32 1e-05, %v579_v38  ;;  %v569_v32 = vmul.f32 %v501_v5, %v1701_v15  ;;  %vm676_vm14 = vweird.f32 %v2287_v58  ;;  %v507_v58 = vpop.xlane.xlu0 %506 }
 0x156   : > { %v903_v4 = vmul.f32 0.5, %v902_v50  ;;  %v1031_v9 = vadd.f32 %v2009_v57, %v995_v31  ;;  %1469 = vrsqrt.f32 %v2460_v54  ;;  %vm917_vm15 = vweird.f32 %v2339_v0 }
 0x157   : > { %v842_v46 = vmul.f32 %v2438_v29, %v841_v25  ;;  %1471 = vrsqrt.f32 %v2465_v40  ;;  %v2482_v2 = vadd.f32 1e-05, %v569_v32  ;;  %v674_v28 = vsub.f32 1.5, %v673_v27  ;;  %vm2536_vm6 = vmor %vm916_vm11, %vm917_vm15  ;;  %v480_v5 = vpop.xlane.xlu1 %479 }
 0x158   : > { %v2484_v13 = vpop.eup %1465  ;;  %1378 = vmatmul.msk.f32.gmra.mxu2 %vm260_vm0, %v1031_v9  ;;  %v943_v11 = vmul.f32 %v659_v12, %v1814_v14  ;;  %v951_v43 = vmul.f32 %v739_v47, %v1802_v18  ;;  %v960_v39 = vmul.f32 %v829_v55, %v1807_v21  ;;  %v669_v14 = vsel %vm2490_vm2, %v2281_v60, %v2441_v36 }
 0x159   : > { %v2508_v49 = vpop.eup %1467  ;;  %v749_v62 = vsel %vm2472_vm13, %v2289_v63, %v2444_v53  ;;  %v2519_v18 = vmul.f32 %v2339_v0, %v914_v48  ;;  %vm906_vm3 = vweird.f32 %v2336_v23  ;;  %1473 = vrsqrt.f32 %v2482_v2 }
 0x15a   : > { %vm677_vm1 = vweird.f32 %v2370_v44  ;;  %v904_v21 = vsub.f32 1.5, %v903_v4  ;;  %vm846_vm4 = vweird.f32 %v2368_v61  ;;  %v831_v20 = vmul.f32 %v2508_v49, %v2426_v56 }
 0x15b   : > { %vm907_vm5 = vweird.f32 %v2422_v34  ;;  %v843_v59 = vmul.f32 0.5, %v842_v46  ;;  %v979_v42 = vmul.f32 %v1985_v17, %v943_v11  ;;  %v987_v37 = vmul.f32 %v1985_v17, %v951_v43  ;;  %vm2558_vm8 = vmor %vm676_vm14, %vm677_vm1 }
 0x15c   : > { %v2530_v47 = vpop.eup %1469  ;;  %v2541_v3 = vmul.f32 %v2370_v44, %v674_v28  ;;  %v921_v1 = vmul.f32 %v2484_v13, %v2424_v26  ;;  %v832_v38 = vmul.f32 %v2508_v49, %v831_v20  ;;  %vm836_vm7 = vweird.f32 %v2426_v56  ;;  %vm2594_vm12 = vmor %vm906_vm3, %vm907_vm5 }
 0x15d   : > { %v996_v8 = vmul.f32 %v1985_v17, %v960_v39  ;;  %v2548_v50 = vpop.eup %1471  ;;  %v919_v6 = vsel %vm2536_vm6, %v2339_v0, %v2519_v18  ;;  %v761_v27 = vmul.f32 %v2530_v47, %v2460_v54  ;;  %v1015_v25 = vadd.f32 %v2009_v57, %v979_v42 }
 0x15e   : > { %v563_v31 = vmul.f32 %v483_v41, %v1701_v15  ;;  %v905_v12 = vmul.f32 %v2422_v34, %v904_v21  ;;  %vm847_vm9 = vweird.f32 %v2438_v29  ;;  %v833_v48 = vmul.f32 0.5, %v832_v38 }
 0x15f   : > { %v851_v32 = vmul.f32 %v2548_v50, %v2465_v40  ;;  %v2570_v4 = vpop.eup %1473  ;;  %v844_v9 = vsub.f32 1.5, %v843_v59  ;;  %v762_v46 = vmul.f32 %v2530_v47, %v761_v27  ;;  %1362 = vmatmul.msk.f32.gmra.mxu0 %vm260_vm0, %v1015_v25  ;;  %v1023_v28 = vadd.f32 %v2009_v57, %v987_v37  ;;  %vm2614_vm15 = vmor %vm846_vm4, %vm847_vm9  ;;  %v555_v33 = vpop.xlane.xlu1 %554 }
 0x160   : > { %v1032_v11 = vadd.f32 %v2009_v57, %v996_v8  ;;  %v679_v43 = vsel %vm2558_vm8, %v2370_v44, %v2541_v3  ;;  %v922_v39 = vmul.f32 %v2484_v13, %v921_v1  ;;  %v834_v21 = vsub.f32 1.5, %v833_v48 }
 0x161   : > { %v751_v20 = vmul.f32 %v2570_v4, %v2482_v2  ;;  %vm837_vm10 = vweird.f32 %v2508_v49  ;;  %vm756_vm11 = vweird.f32 %v2482_v2  ;;  %1370 = vmatmul.msk.f32.gmra.mxu1 %vm260_vm0, %v1023_v28  ;;  %v2587_v41 = vadd.f32 1e-05, %v563_v31 }
 0x162   : > { %1379 = vmatmul.msk.f32.gmra.mxu2 %vm260_vm0, %v1032_v11  ;;  %v571_v59 = vmul.f32 %v507_v58, %v1701_v15  ;;  %v835_v42 = vmul.f32 %v2508_v49, %v834_v21  ;;  %v852_v37 = vmul.f32 %v2548_v50, %v851_v32  ;;  %v562_v1 = vmul.f32 %v480_v5, %v1701_v15  ;;  %vm2627_vm8 = vmor %vm836_vm7, %vm837_vm10 }
 0x163   : > { %v752_v3 = vmul.f32 %v2570_v4, %v751_v20  ;;  %v909_v38 = vsel %vm2594_vm12, %v2422_v34, %v905_v12  ;;  %v2606_v8 = vmul.f32 %v2438_v29, %v844_v9  ;;  %v763_v23 = vmul.f32 0.5, %v762_v46 }
 0x164   : > { %vm766_vm14 = vweird.f32 %v2460_v54  ;;  %1475 = vrsqrt.f32 %v2587_v41  ;;  %v923_v5 = vmul.f32 0.5, %v922_v39  ;;  %vm767_vm3 = vweird.f32 %v2530_v47 }
 0x165   : > { %v753_v34 = vmul.f32 0.5, %v752_v3  ;;  %v2619_v27 = vadd.f32 1e-05, %v571_v59  ;;  %vm926_vm1 = vweird.f32 %v2424_v26  ;;  %vm927_vm5 = vweird.f32 %v2484_v13  ;;  %vm2708_vm9 = vmor %vm766_vm14, %vm767_vm3 }
 0x166   : > { %vm757_vm4 = vweird.f32 %v2570_v4  ;;  %v2632_v25 = vadd.f32 1e-05, %v562_v1  ;;  %v944_v31 = vmul.f32 %v669_v14, %v1823_v24  ;;  %v952_v56 = vmul.f32 %v749_v62, %v1828_v19  ;;  %vm2725_vm6 = vmor %vm926_vm1, %vm927_vm5 }
 0x167   : > { %v839_v12 = vsel %vm2627_vm8, %v2508_v49, %v835_v42  ;;  %v853_v48 = vmul.f32 0.5, %v852_v37  ;;  %vm856_vm7 = vweird.f32 %v2465_v40  ;;  %v754_v32 = vsub.f32 1.5, %v753_v34  ;;  %vm2666_vm13 = vmor %vm756_vm11, %vm757_vm4 }
 0x168   : > { %1477 = vrsqrt.f32 %v2619_v27  ;;  %v849_v24 = vsel %vm2614_vm15, %v2438_v29, %v2606_v8  ;;  %v764_v60 = vsub.f32 1.5, %v763_v23  ;;  %v980_v19 = vmul.f32 %v1985_v17, %v944_v31 }
 0x169   : > { %1479 = vrsqrt.f32 %v2632_v25  ;;  %v924_v63 = vsub.f32 1.5, %v923_v5  ;;  %v755_v36 = vmul.f32 %v2570_v4, %v754_v32  ;;  %v988_v53 = vmul.f32 %v1985_v17, %v952_v56 }
 0x16a   : > { %v968_v22 = vmul.f32 %v909_v38, %v1835_v7  ;;  %v2660_v49 = vpop.eup %1475  ;;  %v1016_v14 = vadd.f32 %v2009_v57, %v980_v19  ;;  %v587_v62 = vmul.f32 %v555_v33, %v1701_v15  ;;  %v945_v58 = vmul.f32 %v679_v43, %v1849_v10 }
 0x16b   : > { %v961_v9 = vmul.f32 %v839_v12, %v1856_v16  ;;  %v854_v46 = vsub.f32 1.5, %v853_v48  ;;  %v759_v7 = vsel %vm2666_vm13, %v2570_v4, %v755_v36  ;;  %v691_v2 = vmul.f32 %v2660_v49, %v2587_v41 }
 0x16c   : > { %v1024_v28 = vadd.f32 %v2009_v57, %v988_v53  ;;  %v765_v11 = vmul.f32 %v2530_v47, %v764_v60  ;;  %1363 = vmatmul.msk.f32.gmra.mxu0 %vm260_vm0, %v1016_v14  ;;  %v1004_v15 = vmul.f32 %v1985_v17, %v968_v22  ;;  %v2683_v39 = vadd.f32 1e-05, %v587_v62  ;;  %v2999_v60 = vld [vmem:[#allocation2_spill] sm:$0xff] }
 0x16d   : > { %v997_v10 = vmul.f32 %v1985_v17, %v961_v9  ;;  %vm857_vm2 = vweird.f32 %v2548_v50  ;;  %v692_v4 = vmul.f32 %v2660_v49, %v691_v2  ;;  %v981_v43 = vmul.f32 %v1985_v17, %v945_v58 }
 0x16e   : > { %v2686_v16 = vpop.eup %1477  ;;  %1371 = vmatmul.msk.f32.gmra.mxu1 %vm260_vm0, %v1024_v28  ;;  %v953_v21 = vmul.f32 %v759_v7, %v1881_v52  ;;  %v1040_v44 = vadd.f32 %v2009_v57, %v1004_v15  ;;  %1481 = vrsqrt.f32 %v2683_v39  ;;  %v969_v42 = vmul.f32 %v919_v6, %v1844_v30  ;;  %vm2736_vm12 = vmor %vm856_vm7, %vm857_vm2  ;;  %v1483_v52 = vld [vmem:[%s2925_s1] ss:$0 sm:$0xff] }
 0x16f   : > { %v1480_v20 = vpop.eup %1479  ;;  %v771_v59 = vmul.f32 %v2686_v16, %v2619_v27  ;;  %v925_v37 = vmul.f32 %v2484_v13, %v924_v63  ;;  %v855_v3 = vmul.f32 %v2548_v50, %v854_v46  ;;  %v693_v1 = vmul.f32 0.5, %v692_v4  ;;  %v3003_v46 = vld [vmem:[#allocation4_spill] sm:$0xff] }
 0x170   : > { %v681_v38 = vmul.f32 %v1480_v20, %v2632_v25  ;;  %v769_v0 = vsel %vm2708_vm9, %v2530_v47, %v765_v11  ;;  %1387 = vmatmul.msk.f32.gmra.mxu3 %vm260_vm0, %v1040_v44  ;;  %v1033_v18 = vadd.f32 %v2009_v57, %v997_v10  ;;  %v962_v54 = vmul.f32 %v849_v24, %v1866_v35  ;;  %v3004_v11 = vld [vmem:[#allocation6_spill] sm:$0xff] }
 0x171   : > { %v772_v30 = vmul.f32 %v2686_v16, %v771_v59  ;;  %vm776_vm10 = vweird.f32 %v2619_v27  ;;  %vm777_vm11 = vweird.f32 %v2686_v16  ;;  %v989_v6 = vmul.f32 %v1985_v17, %v953_v21  ;;  %v3005_v21 = vld [vmem:[#allocation5_spill] sm:$0xff] }
 0x172   : > { %v682_v47 = vmul.f32 %v1480_v20, %v681_v38  ;;  %v694_v26 = vsub.f32 1.5, %v693_v1  ;;  %v1017_v23 = vadd.f32 %v2009_v57, %v981_v43  ;;  %1380 = vmatmul.msk.f32.gmra.mxu2 %vm260_vm0, %v1033_v18  ;;  %v1005_v45 = vmul.f32 %v1985_v17, %v969_v42  ;;  %vm2759_vm3 = vmor %vm776_vm10, %vm777_vm11 }
 0x173   : > { %v773_v8 = vmul.f32 0.5, %v772_v30  ;;  %v929_v5 = vsel %vm2725_vm6, %v2484_v13, %v925_v37  ;;  %v1025_v61 = vadd.f32 %v2009_v57, %v989_v6  ;;  %v954_v40 = vmul.f32 %v769_v0, %v1878_v51  ;;  %v2816_v30 = vld [vmem:[%s2928_s4] ss:$0 sm:$0xff] }
 0x174   : > { %v683_v34 = vmul.f32 0.5, %v682_v47  ;;  %v1482_v31 = vpop.eup %1481  ;;  %vm696_vm14 = vweird.f32 %v2587_v41  ;;  %vm697_vm15 = vweird.f32 %v2660_v49  ;;  %1364 = vmatmul.msk.f32.gmra.mxu0 %vm260_vm0, %v1017_v23  ;;  %v998_v12 = vmul.f32 %v1985_v17, %v962_v54  ;;  %v3002_v41 = vld [vmem:[#allocation3_spill] sm:$0xff] }
 0x175   : > { %v774_v56 = vsub.f32 1.5, %v773_v8  ;;  %v859_v48 = vsel %vm2736_vm12, %v2548_v50, %v855_v3  ;;  %vm687_vm1 = vweird.f32 %v1480_v20  ;;  %v931_v32 = vmul.f32 %v1482_v31, %v2683_v39  ;;  %vm2771_vm5 = vmor %vm696_vm14, %vm697_vm15 }
 0x176   : > { %v684_v13 = vsub.f32 1.5, %v683_v34  ;;  %1372 = vmatmul.msk.f32.gmra.mxu1 %vm260_vm0, %v1025_v61  ;;  %v695_v33 = vmul.f32 %v2660_v49, %v694_v26  ;;  %v1041_v50 = vadd.f32 %v2009_v57, %v1005_v45  ;;  %v970_v19 = vmul.f32 %v929_v5, %v2999_v60 }
 0x177   : > { %v775_v24 = vmul.f32 %v2686_v16, %v774_v56  ;;  %vm686_vm8 = vweird.f32 %v2632_v25  ;;  %v932_v36 = vmul.f32 %v1482_v31, %v931_v32  ;;  %v990_v53 = vmul.f32 %v1985_v17, %v954_v40 }
 0x178   : > { %v685_v63 = vmul.f32 %v1480_v20, %v684_v13  ;;  %vm688_vm4 = vmor %vm686_vm8, %vm687_vm1  ;;  %1388 = vmatmul.msk.f32.gmra.mxu3 %vm260_vm0, %v1041_v50  ;;  %v1034_v29 = vadd.f32 %v2009_v57, %v998_v12  ;;  %v963_v14 = vmul.f32 %v859_v48, %v3002_v41  ;;  %v699_v25 = vsel %vm2771_vm5, %v2660_v49, %v695_v33 }
 0x179   : > { %v779_v22 = vsel %vm2759_vm3, %v2686_v16, %v775_v24  ;;  %v933_v58 = vmul.f32 0.5, %v932_v36  ;;  %v1006_v9 = vmul.f32 %v1985_v17, %v970_v19  ;;  %vm937_vm7 = vweird.f32 %v1482_v31 }
 0x17a   : > { %v689_v62 = vsel %vm688_vm4, %v1480_v20, %v685_v63  ;;  %1381 = vmatmul.msk.f32.gmra.mxu2 %vm260_vm0, %v1034_v29  ;;  %v1026_v28 = vadd.f32 %v2009_v57, %v990_v53  ;;  %v955_v15 = vmul.f32 %v779_v22, %v3004_v11  ;;  %v999_v16 = vmul.f32 %v1985_v17, %v963_v14 }
 0x17b   : > { %v946_v7 = vmul.f32 %v689_v62, %v3003_v46  ;;  %v934_v2 = vsub.f32 1.5, %v933_v58  ;;  %vm936_vm13 = vweird.f32 %v2683_v39  ;;  %v1042_v49 = vadd.f32 %v2009_v57, %v1006_v9  ;;  %v3006_v39 = vld [vmem:[#allocation7_spill] sm:$0xff] }
 0x17c   : > { %vm938_vm2 = vmor %vm936_vm13, %vm937_vm7  ;;  %v947_v20 = vmul.f32 %v699_v25, %v3005_v21  ;;  %v991_v44 = vmul.f32 %v1985_v17, %v955_v15  ;;  %v1035_v42 = vadd.f32 %v2009_v57, %v999_v16  ;;  %vm1261_vm9 = vcmask 785408  }
 0x17d   : > { %v982_v10 = vmul.f32 %v1985_v17, %v946_v7  ;;  %v935_v4 = vmul.f32 %v1482_v31, %v934_v2 }
 0x17e   : > { %1373 = vmatmul.msk.f32.gmra.mxu1 %vm260_vm0, %v1026_v28  ;;  %v983_v3 = vmul.f32 %v1483_v52, %v947_v20  ;;  %v1027_v38 = vadd.f32 %v2009_v57, %v991_v44 }
 0x17f   : > { %v1018_v43 = vadd.f32 %v2009_v57, %v982_v10  ;;  %v939_v59 = vsel %vm938_vm2, %v1482_v31, %v935_v4 }
 0x180   : > { %1389 = vmatmul.msk.f32.gmra.mxu3 %vm260_vm0, %v1042_v49  ;;  %v971_v37 = vmul.f32 %v939_v59, %v3006_v39  ;;  %v1019_v0 = vadd.f32 %v2009_v57, %v983_v3 }
 0x181   : > { %1365 = vmatmul.msk.f32.gmra.mxu0 %vm260_vm0, %v1018_v43 }
 0x182   : > { %1382 = vmatmul.msk.f32.gmra.mxu2 %vm260_vm0, %v1035_v42  ;;  %v1007_v1 = vmul.f32 %v1483_v52, %v971_v37 }
 0x184   : > { %v1043_v17 = vadd.f32 %v2009_v57, %v1007_v1 }
 0x186   : > { %1374 = vmatmul.msk.f32.gmra.mxu1 %vm260_vm0, %v1027_v38 }
 0x188   : > { %1390 = vmatmul.msk.f32.gmra.mxu3 %vm260_vm0, %v1043_v17 }
 0x189   : > { %1366 = vmatmul.msk.f32.gmra.mxu0 %vm260_vm0, %v1019_v0 }
 0x1a1   : > { %v1213_v57 = vpop.f32.mrf.mxu2 }
 0x1a2   : > { %v1214_v18 = vadd.f32 %v2816_v30, %v1213_v57 }
 0x1a4   : > { %1278 = vst.msk [vmem:[%s2823_s19 + $0x80] sm:$0xff] %vm1261_vm9, %v1214_v18 }
 0x1a7   : > { %v1189_v54 = vpop.f32.mrf.mxu1 }
 0x1a8   : > { %v1190_v55 = vadd.f32 %v2816_v30, %v1189_v54 }
 0x1aa   : > { %1270 = vst.msk [vmem:[%s2823_s19 + $0x40] sm:$0xff] %vm1261_vm9, %v1190_v55 }
 0x1ae   : > { %v1237_v47 = vpop.f32.mrf.mxu3 }
 0x1af   : > { %v1238_v6 = vadd.f32 %v2816_v30, %v1237_v47 }
 0x1b1   : > { %1286 = vst.msk [vmem:[%s2823_s19 + $0xc0] sm:$0xff] %vm1261_vm9, %v1238_v6 }
 0x1b3   : > { %v1165_v35 = vpop.f32.mrf.mxu0 }
 0x1b4   : > { %v1166_v26 = vadd.f32 %v2816_v30, %v1165_v35 }
 0x1b6   : > { %1262 = vst.msk [vmem:[%s2823_s19] sm:$0xff] %vm1261_vm9, %v1166_v26 }
 0x1ba   : > { %v1216_v8 = vpop.f32.mrf.mxu2  ;;  %v1240_v45 = vpop.f32.mrf.mxu3 }
 0x1bb   : > { %v1217_v23 = vadd.f32 %v2816_v30, %v1216_v8  ;;  %v1241_v5 = vadd.f32 %v2816_v30, %v1240_v45 }
 0x1bd   : > { %1279 = vst.msk [vmem:[%s2823_s19 + $0x88] sm:$0xff] %vm1261_vm9, %v1217_v23 }
 0x1be   : > { %1287 = vst.msk [vmem:[%s2823_s19 + $0xc8] sm:$0xff] %vm1261_vm9, %v1241_v5  ;;  %v1168_v34 = vpop.f32.mrf.mxu0  ;;  %v1192_v61 = vpop.f32.mrf.mxu1 }
 0x1bf   : > { %v1169_v40 = vadd.f32 %v2816_v30, %v1168_v34  ;;  %v1193_v31 = vadd.f32 %v2816_v30, %v1192_v61 }
 0x1c1   : > { %1263 = vst.msk [vmem:[%s2823_s19 + $0x8] sm:$0xff] %vm1261_vm9, %v1169_v40 }
 0x1c2   : > { %1271 = vst.msk [vmem:[%s2823_s19 + $0x48] sm:$0xff] %vm1261_vm9, %v1193_v31 }
 0x1c6   : > { %v1243_v56 = vpop.f32.mrf.mxu3 }
 0x1c7   : > { %v1244_v12 = vadd.f32 %v2816_v30, %v1243_v56 }
 0x1c8   : > { %v1171_v48 = vpop.f32.mrf.mxu0 }
 0x1c9   : > { %1288 = vst.msk [vmem:[%s2823_s19 + $0xd0] sm:$0xff] %vm1261_vm9, %v1244_v12  ;;  %v1172_v51 = vadd.f32 %v2816_v30, %v1171_v48 }
 0x1cb   : > { %1264 = vst.msk [vmem:[%s2823_s19 + $0x10] sm:$0xff] %vm1261_vm9, %v1172_v51 }
 0x1d1   : > { %v1219_v13 = vpop.f32.mrf.mxu2  ;;  %v1246_v32 = vpop.f32.mrf.mxu3 }
 0x1d2   : > { %v1220_v33 = vadd.f32 %v2816_v30, %v1219_v13  ;;  %v1247_v24 = vadd.f32 %v2816_v30, %v1246_v32  ;;  %v1195_v50 = vpop.f32.mrf.mxu1 }
 0x1d3   : > { %v1196_v60 = vadd.f32 %v2816_v30, %v1195_v50 }
 0x1d4   : > { %1280 = vst.msk [vmem:[%s2823_s19 + $0x90] sm:$0xff] %vm1261_vm9, %v1220_v33 }
 0x1d5   : > { %1289 = vst.msk [vmem:[%s2823_s19 + $0xd8] sm:$0xff] %vm1261_vm9, %v1247_v24 }
 0x1d6   : > { %1272 = vst.msk [vmem:[%s2823_s19 + $0x50] sm:$0xff] %vm1261_vm9, %v1196_v60 }
 0x1db   : > { %v1222_v19 = vpop.f32.mrf.mxu2 }
 0x1dc   : > { %v1223_v27 = vadd.f32 %v2816_v30, %v1222_v19  ;;  %v1174_v63 = vpop.f32.mrf.mxu0 }
 0x1dd   : > { %v1175_v36 = vadd.f32 %v2816_v30, %v1174_v63 }
 0x1de   : > { %1281 = vst.msk [vmem:[%s2823_s19 + $0x98] sm:$0xff] %vm1261_vm9, %v1223_v27  ;;  %v1198_v53 = vpop.f32.mrf.mxu1 }
 0x1df   : > { %1265 = vst.msk [vmem:[%s2823_s19 + $0x18] sm:$0xff] %vm1261_vm9, %v1175_v36  ;;  %v1199_v22 = vadd.f32 %v2816_v30, %v1198_v53 }
 0x1e1   : > { %1273 = vst.msk [vmem:[%s2823_s19 + $0x58] sm:$0xff] %vm1261_vm9, %v1199_v22 }
 0x1e5   : > { %v1225_v29 = vpop.f32.mrf.mxu2 }
 0x1e6   : > { %v1226_v41 = vadd.f32 %v2816_v30, %v1225_v29 }
 0x1e8   : > { %1282 = vst.msk [vmem:[%s2823_s19 + $0xa0] sm:$0xff] %vm1261_vm9, %v1226_v41 }
 0x1e9   : > { %v1177_v14 = vpop.f32.mrf.mxu0 }
 0x1ea   : > { %v1178_v62 = vadd.f32 %v2816_v30, %v1177_v14 }
 0x1eb   : > { %v1201_v58 = vpop.f32.mrf.mxu1 }
 0x1ec   : > { %v1202_v25 = vadd.f32 %v2816_v30, %v1201_v58  ;;  %1266 = vst.msk [vmem:[%s2823_s19 + $0x20] sm:$0xff] %vm1261_vm9, %v1178_v62 }
 0x1ee   : > { %1274 = vst.msk [vmem:[%s2823_s19 + $0x60] sm:$0xff] %vm1261_vm9, %v1202_v25 }
 0x1f1   : > { %v1180_v9 = vpop.f32.mrf.mxu0 }
 0x1f2   : > { %v1181_v46 = vadd.f32 %v2816_v30, %v1180_v9 }
 0x1f3   : > { %v1204_v7 = vpop.f32.mrf.mxu1  ;;  %v1249_v2 = vpop.f32.mrf.mxu3 }
 0x1f4   : > { %v1205_v28 = vadd.f32 %v2816_v30, %v1204_v7  ;;  %v1250_v11 = vadd.f32 %v2816_v30, %v1249_v2  ;;  %1267 = vst.msk [vmem:[%s2823_s19 + $0x28] sm:$0xff] %vm1261_vm9, %v1181_v46 }
 0x1f5   : > { %v1228_v15 = vpop.f32.mrf.mxu2 }
 0x1f6   : > { %1275 = vst.msk [vmem:[%s2823_s19 + $0x68] sm:$0xff] %vm1261_vm9, %v1205_v28  ;;  %v1229_v10 = vadd.f32 %v2816_v30, %v1228_v15 }
 0x1f7   : > { %1290 = vst.msk [vmem:[%s2823_s19 + $0xe0] sm:$0xff] %vm1261_vm9, %v1250_v11 }
 0x1f8   : > { %1283 = vst.msk [vmem:[%s2823_s19 + $0xa8] sm:$0xff] %vm1261_vm9, %v1229_v10 }
 0x1fb   : > { %v1207_v16 = vpop.f32.mrf.mxu1  ;;  %v1252_v4 = vpop.f32.mrf.mxu3 }
 0x1fc   : > { %v1208_v49 = vadd.f32 %v2816_v30, %v1207_v16  ;;  %v1253_v43 = vadd.f32 %v2816_v30, %v1252_v4 }
 0x1fd   : > { %v1231_v21 = vpop.f32.mrf.mxu2 }
 0x1fe   : > { %v1183_v20 = vpop.f32.mrf.mxu0  ;;  %1276 = vst.msk [vmem:[%s2823_s19 + $0x70] sm:$0xff] %vm1261_vm9, %v1208_v49  ;;  %v1232_v59 = vadd.f32 %v2816_v30, %v1231_v21 }
 0x1ff   : > { %1291 = vst.msk [vmem:[%s2823_s19 + $0xe8] sm:$0xff] %vm1261_vm9, %v1253_v43  ;;  %v1184_v44 = vadd.f32 %v2816_v30, %v1183_v20 }
 0x200   : > { %1284 = vst.msk [vmem:[%s2823_s19 + $0xb0] sm:$0xff] %vm1261_vm9, %v1232_v59 }
 0x201   : > { %1268 = vst.msk [vmem:[%s2823_s19 + $0x30] sm:$0xff] %vm1261_vm9, %v1184_v44 }
 0x203   : > { %v1210_v42 = vpop.f32.mrf.mxu1  ;;  %v1255_v39 = vpop.f32.mrf.mxu3 }
 0x204   : > { %v1211_v37 = vadd.f32 %v2816_v30, %v1210_v42  ;;  %v1256_v52 = vadd.f32 %v2816_v30, %v1255_v39 }
 0x205   : > { %v1234_v3 = vpop.f32.mrf.mxu2 }
 0x206   : > { %v1186_v1 = vpop.f32.mrf.mxu0  ;;  %1277 = vst.msk [vmem:[%s2823_s19 + $0x78] sm:$0xff] %vm1261_vm9, %v1211_v37  ;;  %v1235_v38 = vadd.f32 %v2816_v30, %v1234_v3 }
 0x207   : > { %1292 = vst.msk [vmem:[%s2823_s19 + $0xf0] sm:$0xff] %vm1261_vm9, %v1256_v52  ;;  %v1187_v17 = vadd.f32 %v2816_v30, %v1186_v1 }
 0x208   : > { %1285 = vst.msk [vmem:[%s2823_s19 + $0xb8] sm:$0xff] %vm1261_vm9, %v1235_v38 }
 0x209   : > { %1269 = vst.msk [vmem:[%s2823_s19 + $0x38] sm:$0xff] %vm1261_vm9, %v1187_v17 }
 0x20b   : > { %v1258_v0 = vpop.f32.mrf.mxu3 }
 0x20c   : > { %v1259_v57 = vadd.f32 %v2816_v30, %v1258_v0 }
 0x20e   : > { %1293 = vst.msk [vmem:[%s2823_s19 + $0xf8] sm:$0xff] %vm1261_vm9, %v1259_v57 }
 0x20f PF: > { %s15_s18 = sadd.s32 1, %s1490_s18  }
 0x210   : > { %p12_p4 = scmp.ge.s32.totalorder %s15_s18, 4  }
 0x212   :  { %14 = sbr.rel (!%p12_p4) target bundleno = 1 (0x1), region = 70 }

</bundles_post_ra>
